<compile_context>
chip_gen: v7x
topology: tpu7x:2x2x1
jax: 0.10.0
libtpu: 0.0.40
codegen_flags: <defaults>
</compile_context>

<pallas_src>
import math
import jax
import jax.numpy as jnp
from jax.experimental import pallas as pl
from jax.experimental.pallas import tpu as pltpu

SUBLANE = 8
LANE = 128


def make_kernel(num_layers, seq_length, hidden_size, batch_padded):
    T, H, Bp = seq_length, hidden_size, batch_padded

    def kernel(*refs):
        # refs = [x_tb, (wih_T, whh_T, b)*L, fcw_T, bn_scale, bn_shift, ow_T, ob,
        #         out, (hs_inter?,) hs_last]
        x_ref = refs[0]
        lw = refs[1:1 + 3 * num_layers]
        base = 1 + 3 * num_layers
        fcw_ref, bns_ref, bnsh_ref, ow_ref, ob_ref = refs[base:base + 5]
        out_ref = refs[base + 5]
        if num_layers > 1:
            hs_ref = refs[base + 6]       # (T*Bp, H) bf16 inter-layer hidden states
            hsl_ref = refs[base + 7]      # (Bp, T*H) bf16 last-layer flatten scratch
        else:
            hs_ref = None
            hsl_ref = refs[base + 6]

        cur_in = x_ref[...]                                 # (T*Bp, I0) bf16, t-major rows

        for l in range(num_layers):
            wih = lw[3 * l][...]                            # (I_l, 4H) bf16, g cols *2
            whh = lw[3 * l + 1][...]                        # (H, 4H)  bf16, g cols *2
            b = lw[3 * l + 2][...]                          # (1, 4H)  f32 = b_ih+b_hh, g *2

            # Hoisted input projection: one MXU pass + one bias broadcast per layer.
            gx = jnp.dot(cur_in, wih, preferred_element_type=jnp.float32) + b   # (T*Bp, 4H)

            h_bf = jnp.zeros((Bp, H), jnp.bfloat16)         # recurrent matmul LHS (bf16)
            c = jnp.zeros((Bp, H), jnp.float32)
            last = (l == num_layers - 1)

            for t in range(T):                              # T is small & static -> unrolled
                gates = gx[t * Bp:(t + 1) * Bp, :] + jnp.dot(
                    h_bf, whh, preferred_element_type=jnp.float32)               # (Bp, 4H)
                # One 128-lane sigmoid; tanh on the g lanes via tanh(x) = 2*sigmoid(2x) - 1.
                s = jax.nn.sigmoid(gates)
                i_g = s[:, 0:H]
                f_g = s[:, H:2 * H]
                g_g = 2.0 * s[:, 2 * H:3 * H] - 1.0
                o_g = s[:, 3 * H:4 * H]
                c = f_g * c + i_g * g_g
                h_bf = (o_g * jnp.tanh(c)).astype(jnp.bfloat16)
                if last:
                    # Flatten layout directly: row b of hsl = [h_0[b], ..., h_{T-1}[b]].
                    hsl_ref[:, t * H:(t + 1) * H] = h_bf
                else:
                    hs_ref[t * Bp:(t + 1) * Bp, :] = h_bf   # matches gx row ordering

            if not last:
                cur_in = hs_ref[...]                        # already bf16: no cast pass

        # Consolidated Flatten + fc: single (Bp, T*H) @ (T*H, H) MXU pass
        # (fc bias folded into the BN shift below).
        y_acc = jnp.dot(hsl_ref[...], fcw_ref[...], preferred_element_type=jnp.float32)
        # BatchNorm1d(eval) pre-folded into affine, then ReLU.
        y = jnp.maximum(y_acc * bns_ref[...] + bnsh_ref[...], 0.0)
        # Final Linear; output lanes padded to 128 (lane-dense store), sliced in wrapper.
        out_ref[...] = (jnp.dot(y.astype(jnp.bfloat16), ow_ref[...],
                                preferred_element_type=jnp.float32) + ob_ref[...])

    return kernel


def init_params(key, input_size, hidden_size, num_layers, output_size, seq_length):
    """Deterministic parameter init, PyTorch-style shapes."""
    params = {}
    k_lstm = 1.0 / math.sqrt(hidden_size)
    keys = jax.random.split(key, 4 * num_layers + 8)
    ki = 0
    for l in range(num_layers):
        in_sz = input_size if l == 0 else hidden_size
        params[f"w_ih_{l}"] = jax.random.uniform(keys[ki], (4 * hidden_size, in_sz),
                                                 jnp.float32, -k_lstm, k_lstm); ki += 1
        params[f"w_hh_{l}"] = jax.random.uniform(keys[ki], (4 * hidden_size, hidden_size),
                                                 jnp.float32, -k_lstm, k_lstm); ki += 1
        params[f"b_ih_{l}"] = jax.random.uniform(keys[ki], (4 * hidden_size,),
                                                 jnp.float32, -k_lstm, k_lstm); ki += 1
        params[f"b_hh_{l}"] = jax.random.uniform(keys[ki], (4 * hidden_size,),
                                                 jnp.float32, -k_lstm, k_lstm); ki += 1
    k_fc = 1.0 / math.sqrt(seq_length * hidden_size)
    params["fc_w"] = jax.random.uniform(keys[ki], (hidden_size, seq_length * hidden_size),
                                        jnp.float32, -k_fc, k_fc); ki += 1
    params["fc_b"] = jax.random.uniform(keys[ki], (hidden_size,),
                                        jnp.float32, -k_fc, k_fc); ki += 1
    params["bn_gamma"] = 1.0 + 0.1 * jax.random.normal(keys[ki], (hidden_size,), jnp.float32); ki += 1
    params["bn_beta"] = 0.1 * jax.random.normal(keys[ki], (hidden_size,), jnp.float32); ki += 1
    params["bn_rmean"] = jnp.zeros((hidden_size,), jnp.float32)   # BatchNorm1d defaults
    params["bn_rvar"] = jnp.ones((hidden_size,), jnp.float32)
    k_out = 1.0 / math.sqrt(hidden_size)
    params["out_w"] = jax.random.uniform(keys[ki], (output_size, hidden_size),
                                         jnp.float32, -k_out, k_out); ki += 1
    params["out_b"] = jax.random.uniform(keys[ki], (output_size,),
                                         jnp.float32, -k_out, k_out); ki += 1
    return params


def sibil_lstm_forward(x, params, *, hidden_size, num_layers, output_size, seq_length):
    B, T, I = x.shape
    assert T == seq_length
    H, O = hidden_size, output_size

    # Pad batch to a sublane multiple and output to a lane multiple (sliced off below).
    Bp = max(SUBLANE, ((B + SUBLANE - 1) // SUBLANE) * SUBLANE)
    Op = max(LANE, ((O + LANE - 1) // LANE) * LANE)

    def prescale_g(w_t):
        # w_t: (K, 4H) pre-transposed weight; scale the g-gate columns by 2 (exact, pow2)
        # so one sigmoid pass + (2y-1) reproduces tanh on those lanes.
        return w_t.at[:, 2 * H:3 * H].multiply(2.0)

    inputs = []
    # (B, T, I) -> pad batch -> (T*Bp, I): each timestep is one contiguous Bp-row
    # sublane block, read exactly once by the hoisted layer-0 input projection.
    x_p = jnp.zeros((Bp, T, I), jnp.float32).at[:B].set(x.astype(jnp.float32))
    x_tb = jnp.transpose(x_p, (1, 0, 2)).reshape(T * Bp, I)
    inputs.append(x_tb.astype(jnp.bfloat16))

    for l in range(num_layers):
        wih_t = prescale_g(jnp.transpose(params[f"w_ih_{l}"]))        # (I_l, 4H)
        whh_t = prescale_g(jnp.transpose(params[f"w_hh_{l}"]))        # (H, 4H)
        b = (params[f"b_ih_{l}"] + params[f"b_hh_{l}"])[None, :]      # (1, 4H)
        b = b.at[:, 2 * H:3 * H].multiply(2.0)
        inputs.append(wih_t.astype(jnp.bfloat16))
        inputs.append(whh_t.astype(jnp.bfloat16))
        inputs.append(b.astype(jnp.float32))

    inputs.append(jnp.transpose(params["fc_w"]).astype(jnp.bfloat16))  # (T*H, H)

    # BatchNorm1d eval folded to affine; fc bias folded into the shift.
    eps = 1e-5
    bn_scale = params["bn_gamma"] * jax.lax.rsqrt(params["bn_rvar"] + eps)
    bn_shift = params["bn_beta"] - params["bn_rmean"] * bn_scale + params["fc_b"] * bn_scale
    inputs.append(bn_scale[None, :].astype(jnp.float32))               # (1, H)
    inputs.append(bn_shift[None, :].astype(jnp.float32))               # (1, H)

    # Output projection, lane-padded to Op for a lane-dense final matmul/store.
    ow_t = jnp.transpose(params["out_w"])                              # (H, O)
    ow_p = jnp.zeros((H, Op), jnp.float32).at[:, :O].set(ow_t)
    ob_p = jnp.zeros((1, Op), jnp.float32).at[:, :O].set(params["out_b"][None, :])
    inputs.append(ow_p.astype(jnp.bfloat16))                           # (H, Op)
    inputs.append(ob_p.astype(jnp.float32))                            # (1, Op)

    scratch_shapes = []
    if num_layers > 1:
        scratch_shapes.append(pltpu.VMEM((T * Bp, H), jnp.bfloat16))   # inter-layer h
    scratch_shapes.append(pltpu.VMEM((Bp, T * H), jnp.bfloat16))       # flatten scratch

    kernel = make_kernel(num_layers, T, H, Bp)
    out_p = pl.pallas_call(
        kernel,
        out_shape=jax.ShapeDtypeStruct((Bp, Op), jnp.float32),
        in_specs=[pl.BlockSpec(memory_space=pltpu.MemorySpace.VMEM)] * len(inputs),
        out_specs=pl.BlockSpec(memory_space=pltpu.MemorySpace.VMEM),
        scratch_shapes=scratch_shapes,
    )(*inputs)
    return out_p[:B, :O]


def reference_forward(x, params, *, hidden_size, num_layers, output_size, seq_length):
    """Pure-JAX f32 reference of the same forward pass (eval mode)."""
    B, T, _ = x.shape
    H = hidden_size
    layer_in = x
    for l in range(num_layers):
        wih, whh = params[f"w_ih_{l}"], params[f"w_hh_{l}"]
        b = params[f"b_ih_{l}"] + params[f"b_hh_{l}"]
        h = jnp.zeros((B, H), jnp.float32)
        c = jnp.zeros((B, H), jnp.float32)
        hs = []
        for t in range(T):
            gates = layer_in[:, t, :] @ wih.T + h @ whh.T + b
            i = jax.nn.sigmoid(gates[:, :H]); f = jax.nn.sigmoid(gates[:, H:2 * H])
            g = jnp.tanh(gates[:, 2 * H:3 * H]); o = jax.nn.sigmoid(gates[:, 3 * H:])
            c = f * c + i * g
            h = o * jnp.tanh(c)
            hs.append(h)
        layer_in = jnp.stack(hs, axis=1)
    flat = layer_in.reshape(B, T * H)
    y = flat @ params["fc_w"].T + params["fc_b"]
    y = (y - params["bn_rmean"]) / jnp.sqrt(params["bn_rvar"] + 1e-5) * params["bn_gamma"] + params["bn_beta"]
    y = jnp.maximum(y, 0.0)
    return y @ params["out_w"].T + params["out_b"]


if __name__ == "__main__":
    input_size, hidden_size, num_layers, output_size, seq_length = 4, 32, 2, 8, 8
    batch = 2

    key = jax.random.PRNGKey(0)
    kx, kp = jax.random.split(key)
    x = jax.random.normal(kx, (batch, seq_length, input_size), jnp.float32)
    params = init_params(kp, input_size, hidden_size, num_layers, output_size, seq_length)

    out = sibil_lstm_forward(x, params, hidden_size=hidden_size, num_layers=num_layers,
                             output_size=output_size, seq_length=seq_length)
    out = jax.block_until_ready(out)

    ref = reference_forward(x, params, hidden_size=hidden_size, num_layers=num_layers,
                            output_size=output_size, seq_length=seq_length)
    assert out.shape == (batch, output_size)
    # Tolerance accounts for bf16 MXU operands (f32 accumulation) through the recurrence.
    assert jnp.allclose(out, ref, rtol=2e-2, atol=2e-2), "mismatch vs pure-JAX reference"
    print("KERNEL_OK")
</pallas_src>

<mosaic_0001>
module attributes {stable_mosaic.version = 11 : i64} {
  func.func @kernel(%arg0: memref<64x4xbf16, #tpu.memory_space<vmem>>, %arg1: memref<4x128xbf16, #tpu.memory_space<vmem>>, %arg2: memref<32x128xbf16, #tpu.memory_space<vmem>>, %arg3: memref<1x128xf32, #tpu.memory_space<vmem>>, %arg4: memref<32x128xbf16, #tpu.memory_space<vmem>>, %arg5: memref<32x128xbf16, #tpu.memory_space<vmem>>, %arg6: memref<1x128xf32, #tpu.memory_space<vmem>>, %arg7: memref<256x32xbf16, #tpu.memory_space<vmem>>, %arg8: memref<1x32xf32, #tpu.memory_space<vmem>>, %arg9: memref<1x32xf32, #tpu.memory_space<vmem>>, %arg10: memref<32x128xbf16, #tpu.memory_space<vmem>>, %arg11: memref<1x128xf32, #tpu.memory_space<vmem>>, %arg12: memref<8x128xf32, #tpu.memory_space<vmem>>, %arg13: memref<64x32xbf16, #tpu.memory_space<vmem>>, %arg14: memref<8x256xbf16, #tpu.memory_space<vmem>>) attributes {dimension_semantics = [], scalar_prefetch = 0 : i64, scratch_operands = 2 : i64, tpu.core_type = #tpu.core_type<tc>} {
    %c0 = arith.constant 0 : index
    %c0_0 = arith.constant 0 : index
    %0 = vector.load %arg0[%c0, %c0_0] : memref<64x4xbf16, #tpu.memory_space<vmem>>, vector<64x4xbf16>
    %c0_1 = arith.constant 0 : index
    %c0_2 = arith.constant 0 : index
    %1 = vector.load %arg1[%c0_1, %c0_2] : memref<4x128xbf16, #tpu.memory_space<vmem>>, vector<4x128xbf16>
    %c0_3 = arith.constant 0 : index
    %c0_4 = arith.constant 0 : index
    %2 = vector.load %arg2[%c0_3, %c0_4] : memref<32x128xbf16, #tpu.memory_space<vmem>>, vector<32x128xbf16>
    %c0_5 = arith.constant 0 : index
    %c0_6 = arith.constant 0 : index
    %3 = vector.load %arg3[%c0_5, %c0_6] : memref<1x128xf32, #tpu.memory_space<vmem>>, vector<1x128xf32>
    %cst = arith.constant dense<0.000000e+00> : vector<64x128xf32>
    %4 = tpu.matmul %0, %1, %cst {dimension_numbers = #tpu.dot_dimension_numbers<[1], [0], [0], [1], [0, 0, 1, 1], [], []>} : vector<64x4xbf16>, vector<4x128xbf16>, vector<64x128xf32> -> vector<64x128xf32>
    %5 = vector.broadcast %3 : vector<1x128xf32> to vector<64x128xf32>
    %6 = arith.addf %4, %5 : vector<64x128xf32>
    %cst_7 = arith.constant 0.000000e+00 : bf16
    %7 = vector.broadcast %cst_7 : bf16 to vector<8x32xbf16>
    %cst_8 = arith.constant 0.000000e+00 : f32
    %8 = vector.broadcast %cst_8 : f32 to vector<8x32xf32>
    %9 = vector.extract_strided_slice %6 {offsets = [0, 0], sizes = [8, 128], strides = [1, 1]} : vector<64x128xf32> to vector<8x128xf32>
    %cst_9 = arith.constant dense<0.000000e+00> : vector<8x128xf32>
    %10 = tpu.matmul %7, %2, %cst_9 {dimension_numbers = #tpu.dot_dimension_numbers<[1], [0], [0], [1], [0, 0, 1, 1], [], []>} : vector<8x32xbf16>, vector<32x128xbf16>, vector<8x128xf32> -> vector<8x128xf32>
    %11 = arith.addf %9, %10 : vector<8x128xf32>
    %12 = arith.negf %11 : vector<8x128xf32>
    %13 = math.exp %12 : vector<8x128xf32>
    %cst_10 = arith.constant 1.000000e+00 : f32
    %14 = vector.broadcast %cst_10 : f32 to vector<8x128xf32>
    %15 = arith.addf %14, %13 : vector<8x128xf32>
    %16 = arith.divf %14, %15 : vector<8x128xf32>
    %17 = vector.extract_strided_slice %16 {offsets = [0, 0], sizes = [8, 32], strides = [1, 1]} : vector<8x128xf32> to vector<8x32xf32>
    %18 = vector.extract_strided_slice %16 {offsets = [0, 32], sizes = [8, 32], strides = [1, 1]} : vector<8x128xf32> to vector<8x32xf32>
    %19 = vector.extract_strided_slice %16 {offsets = [0, 64], sizes = [8, 32], strides = [1, 1]} : vector<8x128xf32> to vector<8x32xf32>
    %cst_11 = arith.constant 2.000000e+00 : f32
    %20 = vector.broadcast %cst_11 : f32 to vector<8x32xf32>
    %21 = arith.mulf %20, %19 : vector<8x32xf32>
    %cst_12 = arith.constant 1.000000e+00 : f32
    %22 = vector.broadcast %cst_12 : f32 to vector<8x32xf32>
    %23 = arith.subf %21, %22 : vector<8x32xf32>
    %24 = vector.extract_strided_slice %16 {offsets = [0, 96], sizes = [8, 32], strides = [1, 1]} : vector<8x128xf32> to vector<8x32xf32>
    %25 = arith.mulf %18, %8 : vector<8x32xf32>
    %26 = arith.mulf %17, %23 : vector<8x32xf32>
    %27 = arith.addf %25, %26 : vector<8x32xf32>
    %28 = math.tanh %27 : vector<8x32xf32>
    %29 = arith.mulf %24, %28 : vector<8x32xf32>
    %30 = arith.truncf %29 : vector<8x32xf32> to vector<8x32xbf16>
    %c0_13 = arith.constant 0 : index
    %c0_14 = arith.constant 0 : index
    %31 = vector.load %arg13[%c0_13, %c0_14] : memref<64x32xbf16, #tpu.memory_space<vmem>>, vector<8x32xbf16>
    tpu.vector_store %arg13[%c0_13, %c0_14], %30 {strides = array<i32>} : memref<64x32xbf16, #tpu.memory_space<vmem>>, vector<8x32xbf16>,
    %32 = vector.extract_strided_slice %6 {offsets = [8, 0], sizes = [8, 128], strides = [1, 1]} : vector<64x128xf32> to vector<8x128xf32>
    %cst_15 = arith.constant dense<0.000000e+00> : vector<8x128xf32>
    %33 = tpu.matmul %30, %2, %cst_15 {dimension_numbers = #tpu.dot_dimension_numbers<[1], [0], [0], [1], [0, 0, 1, 1], [], []>} : vector<8x32xbf16>, vector<32x128xbf16>, vector<8x128xf32> -> vector<8x128xf32>
    %34 = arith.addf %32, %33 : vector<8x128xf32>
    %35 = arith.negf %34 : vector<8x128xf32>
    %36 = math.exp %35 : vector<8x128xf32>
    %cst_16 = arith.constant 1.000000e+00 : f32
    %37 = vector.broadcast %cst_16 : f32 to vector<8x128xf32>
    %38 = arith.addf %37, %36 : vector<8x128xf32>
    %39 = arith.divf %37, %38 : vector<8x128xf32>
    %40 = vector.extract_strided_slice %39 {offsets = [0, 0], sizes = [8, 32], strides = [1, 1]} : vector<8x128xf32> to vector<8x32xf32>
    %41 = vector.extract_strided_slice %39 {offsets = [0, 32], sizes = [8, 32], strides = [1, 1]} : vector<8x128xf32> to vector<8x32xf32>
    %42 = vector.extract_strided_slice %39 {offsets = [0, 64], sizes = [8, 32], strides = [1, 1]} : vector<8x128xf32> to vector<8x32xf32>
    %cst_17 = arith.constant 2.000000e+00 : f32
    %43 = vector.broadcast %cst_17 : f32 to vector<8x32xf32>
    %44 = arith.mulf %43, %42 : vector<8x32xf32>
    %cst_18 = arith.constant 1.000000e+00 : f32
    %45 = vector.broadcast %cst_18 : f32 to vector<8x32xf32>
    %46 = arith.subf %44, %45 : vector<8x32xf32>
    %47 = vector.extract_strided_slice %39 {offsets = [0, 96], sizes = [8, 32], strides = [1, 1]} : vector<8x128xf32> to vector<8x32xf32>
    %48 = arith.mulf %41, %27 : vector<8x32xf32>
    %49 = arith.mulf %40, %46 : vector<8x32xf32>
    %50 = arith.addf %48, %49 : vector<8x32xf32>
    %51 = math.tanh %50 : vector<8x32xf32>
    %52 = arith.mulf %47, %51 : vector<8x32xf32>
    %53 = arith.truncf %52 : vector<8x32xf32> to vector<8x32xbf16>
    %c8 = arith.constant 8 : index
    %c0_19 = arith.constant 0 : index
    %54 = vector.load %arg13[%c8, %c0_19] : memref<64x32xbf16, #tpu.memory_space<vmem>>, vector<8x32xbf16>
    tpu.vector_store %arg13[%c8, %c0_19], %53 {strides = array<i32>} : memref<64x32xbf16, #tpu.memory_space<vmem>>, vector<8x32xbf16>,
    %55 = vector.extract_strided_slice %6 {offsets = [16, 0], sizes = [8, 128], strides = [1, 1]} : vector<64x128xf32> to vector<8x128xf32>
    %cst_20 = arith.constant dense<0.000000e+00> : vector<8x128xf32>
    %56 = tpu.matmul %53, %2, %cst_20 {dimension_numbers = #tpu.dot_dimension_numbers<[1], [0], [0], [1], [0, 0, 1, 1], [], []>} : vector<8x32xbf16>, vector<32x128xbf16>, vector<8x128xf32> -> vector<8x128xf32>
    %57 = arith.addf %55, %56 : vector<8x128xf32>
    %58 = arith.negf %57 : vector<8x128xf32>
    %59 = math.exp %58 : vector<8x128xf32>
    %cst_21 = arith.constant 1.000000e+00 : f32
    %60 = vector.broadcast %cst_21 : f32 to vector<8x128xf32>
    %61 = arith.addf %60, %59 : vector<8x128xf32>
    %62 = arith.divf %60, %61 : vector<8x128xf32>
    %63 = vector.extract_strided_slice %62 {offsets = [0, 0], sizes = [8, 32], strides = [1, 1]} : vector<8x128xf32> to vector<8x32xf32>
    %64 = vector.extract_strided_slice %62 {offsets = [0, 32], sizes = [8, 32], strides = [1, 1]} : vector<8x128xf32> to vector<8x32xf32>
    %65 = vector.extract_strided_slice %62 {offsets = [0, 64], sizes = [8, 32], strides = [1, 1]} : vector<8x128xf32> to vector<8x32xf32>
    %cst_22 = arith.constant 2.000000e+00 : f32
    %66 = vector.broadcast %cst_22 : f32 to vector<8x32xf32>
    %67 = arith.mulf %66, %65 : vector<8x32xf32>
    %cst_23 = arith.constant 1.000000e+00 : f32
    %68 = vector.broadcast %cst_23 : f32 to vector<8x32xf32>
    %69 = arith.subf %67, %68 : vector<8x32xf32>
    %70 = vector.extract_strided_slice %62 {offsets = [0, 96], sizes = [8, 32], strides = [1, 1]} : vector<8x128xf32> to vector<8x32xf32>
    %71 = arith.mulf %64, %50 : vector<8x32xf32>
    %72 = arith.mulf %63, %69 : vector<8x32xf32>
    %73 = arith.addf %71, %72 : vector<8x32xf32>
    %74 = math.tanh %73 : vector<8x32xf32>
    %75 = arith.mulf %70, %74 : vector<8x32xf32>
    %76 = arith.truncf %75 : vector<8x32xf32> to vector<8x32xbf16>
    %c16 = arith.constant 16 : index
    %c0_24 = arith.constant 0 : index
    %77 = vector.load %arg13[%c16, %c0_24] : memref<64x32xbf16, #tpu.memory_space<vmem>>, vector<8x32xbf16>
    tpu.vector_store %arg13[%c16, %c0_24], %76 {strides = array<i32>} : memref<64x32xbf16, #tpu.memory_space<vmem>>, vector<8x32xbf16>,
    %78 = vector.extract_strided_slice %6 {offsets = [24, 0], sizes = [8, 128], strides = [1, 1]} : vector<64x128xf32> to vector<8x128xf32>
    %cst_25 = arith.constant dense<0.000000e+00> : vector<8x128xf32>
    %79 = tpu.matmul %76, %2, %cst_25 {dimension_numbers = #tpu.dot_dimension_numbers<[1], [0], [0], [1], [0, 0, 1, 1], [], []>} : vector<8x32xbf16>, vector<32x128xbf16>, vector<8x128xf32> -> vector<8x128xf32>
    %80 = arith.addf %78, %79 : vector<8x128xf32>
    %81 = arith.negf %80 : vector<8x128xf32>
    %82 = math.exp %81 : vector<8x128xf32>
    %cst_26 = arith.constant 1.000000e+00 : f32
    %83 = vector.broadcast %cst_26 : f32 to vector<8x128xf32>
    %84 = arith.addf %83, %82 : vector<8x128xf32>
    %85 = arith.divf %83, %84 : vector<8x128xf32>
    %86 = vector.extract_strided_slice %85 {offsets = [0, 0], sizes = [8, 32], strides = [1, 1]} : vector<8x128xf32> to vector<8x32xf32>
    %87 = vector.extract_strided_slice %85 {offsets = [0, 32], sizes = [8, 32], strides = [1, 1]} : vector<8x128xf32> to vector<8x32xf32>
    %88 = vector.extract_strided_slice %85 {offsets = [0, 64], sizes = [8, 32], strides = [1, 1]} : vector<8x128xf32> to vector<8x32xf32>
    %cst_27 = arith.constant 2.000000e+00 : f32
    %89 = vector.broadcast %cst_27 : f32 to vector<8x32xf32>
    %90 = arith.mulf %89, %88 : vector<8x32xf32>
    %cst_28 = arith.constant 1.000000e+00 : f32
    %91 = vector.broadcast %cst_28 : f32 to vector<8x32xf32>
    %92 = arith.subf %90, %91 : vector<8x32xf32>
    %93 = vector.extract_strided_slice %85 {offsets = [0, 96], sizes = [8, 32], strides = [1, 1]} : vector<8x128xf32> to vector<8x32xf32>
    %94 = arith.mulf %87, %73 : vector<8x32xf32>
    %95 = arith.mulf %86, %92 : vector<8x32xf32>
    %96 = arith.addf %94, %95 : vector<8x32xf32>
    %97 = math.tanh %96 : vector<8x32xf32>
    %98 = arith.mulf %93, %97 : vector<8x32xf32>
    %99 = arith.truncf %98 : vector<8x32xf32> to vector<8x32xbf16>
    %c24 = arith.constant 24 : index
    %c0_29 = arith.constant 0 : index
    %100 = vector.load %arg13[%c24, %c0_29] : memref<64x32xbf16, #tpu.memory_space<vmem>>, vector<8x32xbf16>
    tpu.vector_store %arg13[%c24, %c0_29], %99 {strides = array<i32>} : memref<64x32xbf16, #tpu.memory_space<vmem>>, vector<8x32xbf16>,
    %101 = vector.extract_strided_slice %6 {offsets = [32, 0], sizes = [8, 128], strides = [1, 1]} : vector<64x128xf32> to vector<8x128xf32>
    %cst_30 = arith.constant dense<0.000000e+00> : vector<8x128xf32>
    %102 = tpu.matmul %99, %2, %cst_30 {dimension_numbers = #tpu.dot_dimension_numbers<[1], [0], [0], [1], [0, 0, 1, 1], [], []>} : vector<8x32xbf16>, vector<32x128xbf16>, vector<8x128xf32> -> vector<8x128xf32>
    %103 = arith.addf %101, %102 : vector<8x128xf32>
    %104 = arith.negf %103 : vector<8x128xf32>
    %105 = math.exp %104 : vector<8x128xf32>
    %cst_31 = arith.constant 1.000000e+00 : f32
    %106 = vector.broadcast %cst_31 : f32 to vector<8x128xf32>
    %107 = arith.addf %106, %105 : vector<8x128xf32>
    %108 = arith.divf %106, %107 : vector<8x128xf32>
    %109 = vector.extract_strided_slice %108 {offsets = [0, 0], sizes = [8, 32], strides = [1, 1]} : vector<8x128xf32> to vector<8x32xf32>
    %110 = vector.extract_strided_slice %108 {offsets = [0, 32], sizes = [8, 32], strides = [1, 1]} : vector<8x128xf32> to vector<8x32xf32>
    %111 = vector.extract_strided_slice %108 {offsets = [0, 64], sizes = [8, 32], strides = [1, 1]} : vector<8x128xf32> to vector<8x32xf32>
    %cst_32 = arith.constant 2.000000e+00 : f32
    %112 = vector.broadcast %cst_32 : f32 to vector<8x32xf32>
    %113 = arith.mulf %112, %111 : vector<8x32xf32>
    %cst_33 = arith.constant 1.000000e+00 : f32
    %114 = vector.broadcast %cst_33 : f32 to vector<8x32xf32>
    %115 = arith.subf %113, %114 : vector<8x32xf32>
    %116 = vector.extract_strided_slice %108 {offsets = [0, 96], sizes = [8, 32], strides = [1, 1]} : vector<8x128xf32> to vector<8x32xf32>
    %117 = arith.mulf %110, %96 : vector<8x32xf32>
    %118 = arith.mulf %109, %115 : vector<8x32xf32>
    %119 = arith.addf %117, %118 : vector<8x32xf32>
    %120 = math.tanh %119 : vector<8x32xf32>
    %121 = arith.mulf %116, %120 : vector<8x32xf32>
    %122 = arith.truncf %121 : vector<8x32xf32> to vector<8x32xbf16>
    %c32 = arith.constant 32 : index
    %c0_34 = arith.constant 0 : index
    %123 = vector.load %arg13[%c32, %c0_34] : memref<64x32xbf16, #tpu.memory_space<vmem>>, vector<8x32xbf16>
    tpu.vector_store %arg13[%c32, %c0_34], %122 {strides = array<i32>} : memref<64x32xbf16, #tpu.memory_space<vmem>>, vector<8x32xbf16>,
    %124 = vector.extract_strided_slice %6 {offsets = [40, 0], sizes = [8, 128], strides = [1, 1]} : vector<64x128xf32> to vector<8x128xf32>
    %cst_35 = arith.constant dense<0.000000e+00> : vector<8x128xf32>
    %125 = tpu.matmul %122, %2, %cst_35 {dimension_numbers = #tpu.dot_dimension_numbers<[1], [0], [0], [1], [0, 0, 1, 1], [], []>} : vector<8x32xbf16>, vector<32x128xbf16>, vector<8x128xf32> -> vector<8x128xf32>
    %126 = arith.addf %124, %125 : vector<8x128xf32>
    %127 = arith.negf %126 : vector<8x128xf32>
    %128 = math.exp %127 : vector<8x128xf32>
    %cst_36 = arith.constant 1.000000e+00 : f32
    %129 = vector.broadcast %cst_36 : f32 to vector<8x128xf32>
    %130 = arith.addf %129, %128 : vector<8x128xf32>
    %131 = arith.divf %129, %130 : vector<8x128xf32>
    %132 = vector.extract_strided_slice %131 {offsets = [0, 0], sizes = [8, 32], strides = [1, 1]} : vector<8x128xf32> to vector<8x32xf32>
    %133 = vector.extract_strided_slice %131 {offsets = [0, 32], sizes = [8, 32], strides = [1, 1]} : vector<8x128xf32> to vector<8x32xf32>
    %134 = vector.extract_strided_slice %131 {offsets = [0, 64], sizes = [8, 32], strides = [1, 1]} : vector<8x128xf32> to vector<8x32xf32>
    %cst_37 = arith.constant 2.000000e+00 : f32
    %135 = vector.broadcast %cst_37 : f32 to vector<8x32xf32>
    %136 = arith.mulf %135, %134 : vector<8x32xf32>
    %cst_38 = arith.constant 1.000000e+00 : f32
    %137 = vector.broadcast %cst_38 : f32 to vector<8x32xf32>
    %138 = arith.subf %136, %137 : vector<8x32xf32>
    %139 = vector.extract_strided_slice %131 {offsets = [0, 96], sizes = [8, 32], strides = [1, 1]} : vector<8x128xf32> to vector<8x32xf32>
    %140 = arith.mulf %133, %119 : vector<8x32xf32>
    %141 = arith.mulf %132, %138 : vector<8x32xf32>
    %142 = arith.addf %140, %141 : vector<8x32xf32>
    %143 = math.tanh %142 : vector<8x32xf32>
    %144 = arith.mulf %139, %143 : vector<8x32xf32>
    %145 = arith.truncf %144 : vector<8x32xf32> to vector<8x32xbf16>
    %c40 = arith.constant 40 : index
    %c0_39 = arith.constant 0 : index
    %146 = vector.load %arg13[%c40, %c0_39] : memref<64x32xbf16, #tpu.memory_space<vmem>>, vector<8x32xbf16>
    tpu.vector_store %arg13[%c40, %c0_39], %145 {strides = array<i32>} : memref<64x32xbf16, #tpu.memory_space<vmem>>, vector<8x32xbf16>,
    %147 = vector.extract_strided_slice %6 {offsets = [48, 0], sizes = [8, 128], strides = [1, 1]} : vector<64x128xf32> to vector<8x128xf32>
    %cst_40 = arith.constant dense<0.000000e+00> : vector<8x128xf32>
    %148 = tpu.matmul %145, %2, %cst_40 {dimension_numbers = #tpu.dot_dimension_numbers<[1], [0], [0], [1], [0, 0, 1, 1], [], []>} : vector<8x32xbf16>, vector<32x128xbf16>, vector<8x128xf32> -> vector<8x128xf32>
    %149 = arith.addf %147, %148 : vector<8x128xf32>
    %150 = arith.negf %149 : vector<8x128xf32>
    %151 = math.exp %150 : vector<8x128xf32>
    %cst_41 = arith.constant 1.000000e+00 : f32
    %152 = vector.broadcast %cst_41 : f32 to vector<8x128xf32>
    %153 = arith.addf %152, %151 : vector<8x128xf32>
    %154 = arith.divf %152, %153 : vector<8x128xf32>
    %155 = vector.extract_strided_slice %154 {offsets = [0, 0], sizes = [8, 32], strides = [1, 1]} : vector<8x128xf32> to vector<8x32xf32>
    %156 = vector.extract_strided_slice %154 {offsets = [0, 32], sizes = [8, 32], strides = [1, 1]} : vector<8x128xf32> to vector<8x32xf32>
    %157 = vector.extract_strided_slice %154 {offsets = [0, 64], sizes = [8, 32], strides = [1, 1]} : vector<8x128xf32> to vector<8x32xf32>
    %cst_42 = arith.constant 2.000000e+00 : f32
    %158 = vector.broadcast %cst_42 : f32 to vector<8x32xf32>
    %159 = arith.mulf %158, %157 : vector<8x32xf32>
    %cst_43 = arith.constant 1.000000e+00 : f32
    %160 = vector.broadcast %cst_43 : f32 to vector<8x32xf32>
    %161 = arith.subf %159, %160 : vector<8x32xf32>
    %162 = vector.extract_strided_slice %154 {offsets = [0, 96], sizes = [8, 32], strides = [1, 1]} : vector<8x128xf32> to vector<8x32xf32>
    %163 = arith.mulf %156, %142 : vector<8x32xf32>
    %164 = arith.mulf %155, %161 : vector<8x32xf32>
    %165 = arith.addf %163, %164 : vector<8x32xf32>
    %166 = math.tanh %165 : vector<8x32xf32>
    %167 = arith.mulf %162, %166 : vector<8x32xf32>
    %168 = arith.truncf %167 : vector<8x32xf32> to vector<8x32xbf16>
    %c48 = arith.constant 48 : index
    %c0_44 = arith.constant 0 : index
    %169 = vector.load %arg13[%c48, %c0_44] : memref<64x32xbf16, #tpu.memory_space<vmem>>, vector<8x32xbf16>
    tpu.vector_store %arg13[%c48, %c0_44], %168 {strides = array<i32>} : memref<64x32xbf16, #tpu.memory_space<vmem>>, vector<8x32xbf16>,
    %170 = vector.extract_strided_slice %6 {offsets = [56, 0], sizes = [8, 128], strides = [1, 1]} : vector<64x128xf32> to vector<8x128xf32>
    %cst_45 = arith.constant dense<0.000000e+00> : vector<8x128xf32>
    %171 = tpu.matmul %168, %2, %cst_45 {dimension_numbers = #tpu.dot_dimension_numbers<[1], [0], [0], [1], [0, 0, 1, 1], [], []>} : vector<8x32xbf16>, vector<32x128xbf16>, vector<8x128xf32> -> vector<8x128xf32>
    %172 = arith.addf %170, %171 : vector<8x128xf32>
    %173 = arith.negf %172 : vector<8x128xf32>
    %174 = math.exp %173 : vector<8x128xf32>
    %cst_46 = arith.constant 1.000000e+00 : f32
    %175 = vector.broadcast %cst_46 : f32 to vector<8x128xf32>
    %176 = arith.addf %175, %174 : vector<8x128xf32>
    %177 = arith.divf %175, %176 : vector<8x128xf32>
    %178 = vector.extract_strided_slice %177 {offsets = [0, 0], sizes = [8, 32], strides = [1, 1]} : vector<8x128xf32> to vector<8x32xf32>
    %179 = vector.extract_strided_slice %177 {offsets = [0, 32], sizes = [8, 32], strides = [1, 1]} : vector<8x128xf32> to vector<8x32xf32>
    %180 = vector.extract_strided_slice %177 {offsets = [0, 64], sizes = [8, 32], strides = [1, 1]} : vector<8x128xf32> to vector<8x32xf32>
    %cst_47 = arith.constant 2.000000e+00 : f32
    %181 = vector.broadcast %cst_47 : f32 to vector<8x32xf32>
    %182 = arith.mulf %181, %180 : vector<8x32xf32>
    %cst_48 = arith.constant 1.000000e+00 : f32
    %183 = vector.broadcast %cst_48 : f32 to vector<8x32xf32>
    %184 = arith.subf %182, %183 : vector<8x32xf32>
    %185 = vector.extract_strided_slice %177 {offsets = [0, 96], sizes = [8, 32], strides = [1, 1]} : vector<8x128xf32> to vector<8x32xf32>
    %186 = arith.mulf %179, %165 : vector<8x32xf32>
    %187 = arith.mulf %178, %184 : vector<8x32xf32>
    %188 = arith.addf %186, %187 : vector<8x32xf32>
    %189 = math.tanh %188 : vector<8x32xf32>
    %190 = arith.mulf %185, %189 : vector<8x32xf32>
    %191 = arith.truncf %190 : vector<8x32xf32> to vector<8x32xbf16>
    %c56 = arith.constant 56 : index
    %c0_49 = arith.constant 0 : index
    %192 = vector.load %arg13[%c56, %c0_49] : memref<64x32xbf16, #tpu.memory_space<vmem>>, vector<8x32xbf16>
    tpu.vector_store %arg13[%c56, %c0_49], %191 {strides = array<i32>} : memref<64x32xbf16, #tpu.memory_space<vmem>>, vector<8x32xbf16>,
    %c0_50 = arith.constant 0 : index
    %c0_51 = arith.constant 0 : index
    %193 = vector.load %arg13[%c0_50, %c0_51] : memref<64x32xbf16, #tpu.memory_space<vmem>>, vector<64x32xbf16>
    %c0_52 = arith.constant 0 : index
    %c0_53 = arith.constant 0 : index
    %194 = vector.load %arg4[%c0_52, %c0_53] : memref<32x128xbf16, #tpu.memory_space<vmem>>, vector<32x128xbf16>
    %c0_54 = arith.constant 0 : index
    %c0_55 = arith.constant 0 : index
    %195 = vector.load %arg5[%c0_54, %c0_55] : memref<32x128xbf16, #tpu.memory_space<vmem>>, vector<32x128xbf16>
    %c0_56 = arith.constant 0 : index
    %c0_57 = arith.constant 0 : index
    %196 = vector.load %arg6[%c0_56, %c0_57] : memref<1x128xf32, #tpu.memory_space<vmem>>, vector<1x128xf32>
    %cst_58 = arith.constant dense<0.000000e+00> : vector<64x128xf32>
    %197 = tpu.matmul %193, %194, %cst_58 {dimension_numbers = #tpu.dot_dimension_numbers<[1], [0], [0], [1], [0, 0, 1, 1], [], []>} : vector<64x32xbf16>, vector<32x128xbf16>, vector<64x128xf32> -> vector<64x128xf32>
    %198 = vector.broadcast %196 : vector<1x128xf32> to vector<64x128xf32>
    %199 = arith.addf %197, %198 : vector<64x128xf32>
    %cst_59 = arith.constant 0.000000e+00 : bf16
    %200 = vector.broadcast %cst_59 : bf16 to vector<8x32xbf16>
    %cst_60 = arith.constant 0.000000e+00 : f32
    %201 = vector.broadcast %cst_60 : f32 to vector<8x32xf32>
    %202 = vector.extract_strided_slice %199 {offsets = [0, 0], sizes = [8, 128], strides = [1, 1]} : vector<64x128xf32> to vector<8x128xf32>
    %cst_61 = arith.constant dense<0.000000e+00> : vector<8x128xf32>
    %203 = tpu.matmul %200, %195, %cst_61 {dimension_numbers = #tpu.dot_dimension_numbers<[1], [0], [0], [1], [0, 0, 1, 1], [], []>} : vector<8x32xbf16>, vector<32x128xbf16>, vector<8x128xf32> -> vector<8x128xf32>
    %204 = arith.addf %202, %203 : vector<8x128xf32>
    %205 = arith.negf %204 : vector<8x128xf32>
    %206 = math.exp %205 : vector<8x128xf32>
    %cst_62 = arith.constant 1.000000e+00 : f32
    %207 = vector.broadcast %cst_62 : f32 to vector<8x128xf32>
    %208 = arith.addf %207, %206 : vector<8x128xf32>
    %209 = arith.divf %207, %208 : vector<8x128xf32>
    %210 = vector.extract_strided_slice %209 {offsets = [0, 0], sizes = [8, 32], strides = [1, 1]} : vector<8x128xf32> to vector<8x32xf32>
    %211 = vector.extract_strided_slice %209 {offsets = [0, 32], sizes = [8, 32], strides = [1, 1]} : vector<8x128xf32> to vector<8x32xf32>
    %212 = vector.extract_strided_slice %209 {offsets = [0, 64], sizes = [8, 32], strides = [1, 1]} : vector<8x128xf32> to vector<8x32xf32>
    %cst_63 = arith.constant 2.000000e+00 : f32
    %213 = vector.broadcast %cst_63 : f32 to vector<8x32xf32>
    %214 = arith.mulf %213, %212 : vector<8x32xf32>
    %cst_64 = arith.constant 1.000000e+00 : f32
    %215 = vector.broadcast %cst_64 : f32 to vector<8x32xf32>
    %216 = arith.subf %214, %215 : vector<8x32xf32>
    %217 = vector.extract_strided_slice %209 {offsets = [0, 96], sizes = [8, 32], strides = [1, 1]} : vector<8x128xf32> to vector<8x32xf32>
    %218 = arith.mulf %211, %201 : vector<8x32xf32>
    %219 = arith.mulf %210, %216 : vector<8x32xf32>
    %220 = arith.addf %218, %219 : vector<8x32xf32>
    %221 = math.tanh %220 : vector<8x32xf32>
    %222 = arith.mulf %217, %221 : vector<8x32xf32>
    %223 = arith.truncf %222 : vector<8x32xf32> to vector<8x32xbf16>
    %c0_65 = arith.constant 0 : index
    %c0_66 = arith.constant 0 : index
    %224 = vector.load %arg14[%c0_65, %c0_66] : memref<8x256xbf16, #tpu.memory_space<vmem>>, vector<8x32xbf16>
    tpu.vector_store %arg14[%c0_65, %c0_66], %223 {strides = array<i32>} : memref<8x256xbf16, #tpu.memory_space<vmem>>, vector<8x32xbf16>,
    %225 = vector.extract_strided_slice %199 {offsets = [8, 0], sizes = [8, 128], strides = [1, 1]} : vector<64x128xf32> to vector<8x128xf32>
    %cst_67 = arith.constant dense<0.000000e+00> : vector<8x128xf32>
    %226 = tpu.matmul %223, %195, %cst_67 {dimension_numbers = #tpu.dot_dimension_numbers<[1], [0], [0], [1], [0, 0, 1, 1], [], []>} : vector<8x32xbf16>, vector<32x128xbf16>, vector<8x128xf32> -> vector<8x128xf32>
    %227 = arith.addf %225, %226 : vector<8x128xf32>
    %228 = arith.negf %227 : vector<8x128xf32>
    %229 = math.exp %228 : vector<8x128xf32>
    %cst_68 = arith.constant 1.000000e+00 : f32
    %230 = vector.broadcast %cst_68 : f32 to vector<8x128xf32>
    %231 = arith.addf %230, %229 : vector<8x128xf32>
    %232 = arith.divf %230, %231 : vector<8x128xf32>
    %233 = vector.extract_strided_slice %232 {offsets = [0, 0], sizes = [8, 32], strides = [1, 1]} : vector<8x128xf32> to vector<8x32xf32>
    %234 = vector.extract_strided_slice %232 {offsets = [0, 32], sizes = [8, 32], strides = [1, 1]} : vector<8x128xf32> to vector<8x32xf32>
    %235 = vector.extract_strided_slice %232 {offsets = [0, 64], sizes = [8, 32], strides = [1, 1]} : vector<8x128xf32> to vector<8x32xf32>
    %cst_69 = arith.constant 2.000000e+00 : f32
    %236 = vector.broadcast %cst_69 : f32 to vector<8x32xf32>
    %237 = arith.mulf %236, %235 : vector<8x32xf32>
    %cst_70 = arith.constant 1.000000e+00 : f32
    %238 = vector.broadcast %cst_70 : f32 to vector<8x32xf32>
    %239 = arith.subf %237, %238 : vector<8x32xf32>
    %240 = vector.extract_strided_slice %232 {offsets = [0, 96], sizes = [8, 32], strides = [1, 1]} : vector<8x128xf32> to vector<8x32xf32>
    %241 = arith.mulf %234, %220 : vector<8x32xf32>
    %242 = arith.mulf %233, %239 : vector<8x32xf32>
    %243 = arith.addf %241, %242 : vector<8x32xf32>
    %244 = math.tanh %243 : vector<8x32xf32>
    %245 = arith.mulf %240, %244 : vector<8x32xf32>
    %246 = arith.truncf %245 : vector<8x32xf32> to vector<8x32xbf16>
    %c0_71 = arith.constant 0 : index
    %c32_72 = arith.constant 32 : index
    %247 = vector.load %arg14[%c0_71, %c32_72] : memref<8x256xbf16, #tpu.memory_space<vmem>>, vector<8x32xbf16>
    tpu.vector_store %arg14[%c0_71, %c32_72], %246 {strides = array<i32>} : memref<8x256xbf16, #tpu.memory_space<vmem>>, vector<8x32xbf16>,
    %248 = vector.extract_strided_slice %199 {offsets = [16, 0], sizes = [8, 128], strides = [1, 1]} : vector<64x128xf32> to vector<8x128xf32>
    %cst_73 = arith.constant dense<0.000000e+00> : vector<8x128xf32>
    %249 = tpu.matmul %246, %195, %cst_73 {dimension_numbers = #tpu.dot_dimension_numbers<[1], [0], [0], [1], [0, 0, 1, 1], [], []>} : vector<8x32xbf16>, vector<32x128xbf16>, vector<8x128xf32> -> vector<8x128xf32>
    %250 = arith.addf %248, %249 : vector<8x128xf32>
    %251 = arith.negf %250 : vector<8x128xf32>
    %252 = math.exp %251 : vector<8x128xf32>
    %cst_74 = arith.constant 1.000000e+00 : f32
    %253 = vector.broadcast %cst_74 : f32 to vector<8x128xf32>
    %254 = arith.addf %253, %252 : vector<8x128xf32>
    %255 = arith.divf %253, %254 : vector<8x128xf32>
    %256 = vector.extract_strided_slice %255 {offsets = [0, 0], sizes = [8, 32], strides = [1, 1]} : vector<8x128xf32> to vector<8x32xf32>
    %257 = vector.extract_strided_slice %255 {offsets = [0, 32], sizes = [8, 32], strides = [1, 1]} : vector<8x128xf32> to vector<8x32xf32>
    %258 = vector.extract_strided_slice %255 {offsets = [0, 64], sizes = [8, 32], strides = [1, 1]} : vector<8x128xf32> to vector<8x32xf32>
    %cst_75 = arith.constant 2.000000e+00 : f32
    %259 = vector.broadcast %cst_75 : f32 to vector<8x32xf32>
    %260 = arith.mulf %259, %258 : vector<8x32xf32>
    %cst_76 = arith.constant 1.000000e+00 : f32
    %261 = vector.broadcast %cst_76 : f32 to vector<8x32xf32>
    %262 = arith.subf %260, %261 : vector<8x32xf32>
    %263 = vector.extract_strided_slice %255 {offsets = [0, 96], sizes = [8, 32], strides = [1, 1]} : vector<8x128xf32> to vector<8x32xf32>
    %264 = arith.mulf %257, %243 : vector<8x32xf32>
    %265 = arith.mulf %256, %262 : vector<8x32xf32>
    %266 = arith.addf %264, %265 : vector<8x32xf32>
    %267 = math.tanh %266 : vector<8x32xf32>
    %268 = arith.mulf %263, %267 : vector<8x32xf32>
    %269 = arith.truncf %268 : vector<8x32xf32> to vector<8x32xbf16>
    %c0_77 = arith.constant 0 : index
    %c64 = arith.constant 64 : index
    %270 = vector.load %arg14[%c0_77, %c64] : memref<8x256xbf16, #tpu.memory_space<vmem>>, vector<8x32xbf16>
    tpu.vector_store %arg14[%c0_77, %c64], %269 {strides = array<i32>} : memref<8x256xbf16, #tpu.memory_space<vmem>>, vector<8x32xbf16>,
    %271 = vector.extract_strided_slice %199 {offsets = [24, 0], sizes = [8, 128], strides = [1, 1]} : vector<64x128xf32> to vector<8x128xf32>
    %cst_78 = arith.constant dense<0.000000e+00> : vector<8x128xf32>
    %272 = tpu.matmul %269, %195, %cst_78 {dimension_numbers = #tpu.dot_dimension_numbers<[1], [0], [0], [1], [0, 0, 1, 1], [], []>} : vector<8x32xbf16>, vector<32x128xbf16>, vector<8x128xf32> -> vector<8x128xf32>
    %273 = arith.addf %271, %272 : vector<8x128xf32>
    %274 = arith.negf %273 : vector<8x128xf32>
    %275 = math.exp %274 : vector<8x128xf32>
    %cst_79 = arith.constant 1.000000e+00 : f32
    %276 = vector.broadcast %cst_79 : f32 to vector<8x128xf32>
    %277 = arith.addf %276, %275 : vector<8x128xf32>
    %278 = arith.divf %276, %277 : vector<8x128xf32>
    %279 = vector.extract_strided_slice %278 {offsets = [0, 0], sizes = [8, 32], strides = [1, 1]} : vector<8x128xf32> to vector<8x32xf32>
    %280 = vector.extract_strided_slice %278 {offsets = [0, 32], sizes = [8, 32], strides = [1, 1]} : vector<8x128xf32> to vector<8x32xf32>
    %281 = vector.extract_strided_slice %278 {offsets = [0, 64], sizes = [8, 32], strides = [1, 1]} : vector<8x128xf32> to vector<8x32xf32>
    %cst_80 = arith.constant 2.000000e+00 : f32
    %282 = vector.broadcast %cst_80 : f32 to vector<8x32xf32>
    %283 = arith.mulf %282, %281 : vector<8x32xf32>
    %cst_81 = arith.constant 1.000000e+00 : f32
    %284 = vector.broadcast %cst_81 : f32 to vector<8x32xf32>
    %285 = arith.subf %283, %284 : vector<8x32xf32>
    %286 = vector.extract_strided_slice %278 {offsets = [0, 96], sizes = [8, 32], strides = [1, 1]} : vector<8x128xf32> to vector<8x32xf32>
    %287 = arith.mulf %280, %266 : vector<8x32xf32>
    %288 = arith.mulf %279, %285 : vector<8x32xf32>
    %289 = arith.addf %287, %288 : vector<8x32xf32>
    %290 = math.tanh %289 : vector<8x32xf32>
    %291 = arith.mulf %286, %290 : vector<8x32xf32>
    %292 = arith.truncf %291 : vector<8x32xf32> to vector<8x32xbf16>
    %c0_82 = arith.constant 0 : index
    %c96 = arith.constant 96 : index
    %293 = vector.load %arg14[%c0_82, %c96] : memref<8x256xbf16, #tpu.memory_space<vmem>>, vector<8x32xbf16>
    tpu.vector_store %arg14[%c0_82, %c96], %292 {strides = array<i32>} : memref<8x256xbf16, #tpu.memory_space<vmem>>, vector<8x32xbf16>,
    %294 = vector.extract_strided_slice %199 {offsets = [32, 0], sizes = [8, 128], strides = [1, 1]} : vector<64x128xf32> to vector<8x128xf32>
    %cst_83 = arith.constant dense<0.000000e+00> : vector<8x128xf32>
    %295 = tpu.matmul %292, %195, %cst_83 {dimension_numbers = #tpu.dot_dimension_numbers<[1], [0], [0], [1], [0, 0, 1, 1], [], []>} : vector<8x32xbf16>, vector<32x128xbf16>, vector<8x128xf32> -> vector<8x128xf32>
    %296 = arith.addf %294, %295 : vector<8x128xf32>
    %297 = arith.negf %296 : vector<8x128xf32>
    %298 = math.exp %297 : vector<8x128xf32>
    %cst_84 = arith.constant 1.000000e+00 : f32
    %299 = vector.broadcast %cst_84 : f32 to vector<8x128xf32>
    %300 = arith.addf %299, %298 : vector<8x128xf32>
    %301 = arith.divf %299, %300 : vector<8x128xf32>
    %302 = vector.extract_strided_slice %301 {offsets = [0, 0], sizes = [8, 32], strides = [1, 1]} : vector<8x128xf32> to vector<8x32xf32>
    %303 = vector.extract_strided_slice %301 {offsets = [0, 32], sizes = [8, 32], strides = [1, 1]} : vector<8x128xf32> to vector<8x32xf32>
    %304 = vector.extract_strided_slice %301 {offsets = [0, 64], sizes = [8, 32], strides = [1, 1]} : vector<8x128xf32> to vector<8x32xf32>
    %cst_85 = arith.constant 2.000000e+00 : f32
    %305 = vector.broadcast %cst_85 : f32 to vector<8x32xf32>
    %306 = arith.mulf %305, %304 : vector<8x32xf32>
    %cst_86 = arith.constant 1.000000e+00 : f32
    %307 = vector.broadcast %cst_86 : f32 to vector<8x32xf32>
    %308 = arith.subf %306, %307 : vector<8x32xf32>
    %309 = vector.extract_strided_slice %301 {offsets = [0, 96], sizes = [8, 32], strides = [1, 1]} : vector<8x128xf32> to vector<8x32xf32>
    %310 = arith.mulf %303, %289 : vector<8x32xf32>
    %311 = arith.mulf %302, %308 : vector<8x32xf32>
    %312 = arith.addf %310, %311 : vector<8x32xf32>
    %313 = math.tanh %312 : vector<8x32xf32>
    %314 = arith.mulf %309, %313 : vector<8x32xf32>
    %315 = arith.truncf %314 : vector<8x32xf32> to vector<8x32xbf16>
    %c0_87 = arith.constant 0 : index
    %c128 = arith.constant 128 : index
    %316 = vector.load %arg14[%c0_87, %c128] : memref<8x256xbf16, #tpu.memory_space<vmem>>, vector<8x32xbf16>
    tpu.vector_store %arg14[%c0_87, %c128], %315 {strides = array<i32>} : memref<8x256xbf16, #tpu.memory_space<vmem>>, vector<8x32xbf16>,
    %317 = vector.extract_strided_slice %199 {offsets = [40, 0], sizes = [8, 128], strides = [1, 1]} : vector<64x128xf32> to vector<8x128xf32>
    %cst_88 = arith.constant dense<0.000000e+00> : vector<8x128xf32>
    %318 = tpu.matmul %315, %195, %cst_88 {dimension_numbers = #tpu.dot_dimension_numbers<[1], [0], [0], [1], [0, 0, 1, 1], [], []>} : vector<8x32xbf16>, vector<32x128xbf16>, vector<8x128xf32> -> vector<8x128xf32>
    %319 = arith.addf %317, %318 : vector<8x128xf32>
    %320 = arith.negf %319 : vector<8x128xf32>
    %321 = math.exp %320 : vector<8x128xf32>
    %cst_89 = arith.constant 1.000000e+00 : f32
    %322 = vector.broadcast %cst_89 : f32 to vector<8x128xf32>
    %323 = arith.addf %322, %321 : vector<8x128xf32>
    %324 = arith.divf %322, %323 : vector<8x128xf32>
    %325 = vector.extract_strided_slice %324 {offsets = [0, 0], sizes = [8, 32], strides = [1, 1]} : vector<8x128xf32> to vector<8x32xf32>
    %326 = vector.extract_strided_slice %324 {offsets = [0, 32], sizes = [8, 32], strides = [1, 1]} : vector<8x128xf32> to vector<8x32xf32>
    %327 = vector.extract_strided_slice %324 {offsets = [0, 64], sizes = [8, 32], strides = [1, 1]} : vector<8x128xf32> to vector<8x32xf32>
    %cst_90 = arith.constant 2.000000e+00 : f32
    %328 = vector.broadcast %cst_90 : f32 to vector<8x32xf32>
    %329 = arith.mulf %328, %327 : vector<8x32xf32>
    %cst_91 = arith.constant 1.000000e+00 : f32
    %330 = vector.broadcast %cst_91 : f32 to vector<8x32xf32>
    %331 = arith.subf %329, %330 : vector<8x32xf32>
    %332 = vector.extract_strided_slice %324 {offsets = [0, 96], sizes = [8, 32], strides = [1, 1]} : vector<8x128xf32> to vector<8x32xf32>
    %333 = arith.mulf %326, %312 : vector<8x32xf32>
    %334 = arith.mulf %325, %331 : vector<8x32xf32>
    %335 = arith.addf %333, %334 : vector<8x32xf32>
    %336 = math.tanh %335 : vector<8x32xf32>
    %337 = arith.mulf %332, %336 : vector<8x32xf32>
    %338 = arith.truncf %337 : vector<8x32xf32> to vector<8x32xbf16>
    %c0_92 = arith.constant 0 : index
    %c160 = arith.constant 160 : index
    %339 = vector.load %arg14[%c0_92, %c160] : memref<8x256xbf16, #tpu.memory_space<vmem>>, vector<8x32xbf16>
    tpu.vector_store %arg14[%c0_92, %c160], %338 {strides = array<i32>} : memref<8x256xbf16, #tpu.memory_space<vmem>>, vector<8x32xbf16>,
    %340 = vector.extract_strided_slice %199 {offsets = [48, 0], sizes = [8, 128], strides = [1, 1]} : vector<64x128xf32> to vector<8x128xf32>
    %cst_93 = arith.constant dense<0.000000e+00> : vector<8x128xf32>
    %341 = tpu.matmul %338, %195, %cst_93 {dimension_numbers = #tpu.dot_dimension_numbers<[1], [0], [0], [1], [0, 0, 1, 1], [], []>} : vector<8x32xbf16>, vector<32x128xbf16>, vector<8x128xf32> -> vector<8x128xf32>
    %342 = arith.addf %340, %341 : vector<8x128xf32>
    %343 = arith.negf %342 : vector<8x128xf32>
    %344 = math.exp %343 : vector<8x128xf32>
    %cst_94 = arith.constant 1.000000e+00 : f32
    %345 = vector.broadcast %cst_94 : f32 to vector<8x128xf32>
    %346 = arith.addf %345, %344 : vector<8x128xf32>
    %347 = arith.divf %345, %346 : vector<8x128xf32>
    %348 = vector.extract_strided_slice %347 {offsets = [0, 0], sizes = [8, 32], strides = [1, 1]} : vector<8x128xf32> to vector<8x32xf32>
    %349 = vector.extract_strided_slice %347 {offsets = [0, 32], sizes = [8, 32], strides = [1, 1]} : vector<8x128xf32> to vector<8x32xf32>
    %350 = vector.extract_strided_slice %347 {offsets = [0, 64], sizes = [8, 32], strides = [1, 1]} : vector<8x128xf32> to vector<8x32xf32>
    %cst_95 = arith.constant 2.000000e+00 : f32
    %351 = vector.broadcast %cst_95 : f32 to vector<8x32xf32>
    %352 = arith.mulf %351, %350 : vector<8x32xf32>
    %cst_96 = arith.constant 1.000000e+00 : f32
    %353 = vector.broadcast %cst_96 : f32 to vector<8x32xf32>
    %354 = arith.subf %352, %353 : vector<8x32xf32>
    %355 = vector.extract_strided_slice %347 {offsets = [0, 96], sizes = [8, 32], strides = [1, 1]} : vector<8x128xf32> to vector<8x32xf32>
    %356 = arith.mulf %349, %335 : vector<8x32xf32>
    %357 = arith.mulf %348, %354 : vector<8x32xf32>
    %358 = arith.addf %356, %357 : vector<8x32xf32>
    %359 = math.tanh %358 : vector<8x32xf32>
    %360 = arith.mulf %355, %359 : vector<8x32xf32>
    %361 = arith.truncf %360 : vector<8x32xf32> to vector<8x32xbf16>
    %c0_97 = arith.constant 0 : index
    %c192 = arith.constant 192 : index
    %362 = vector.load %arg14[%c0_97, %c192] : memref<8x256xbf16, #tpu.memory_space<vmem>>, vector<8x32xbf16>
    tpu.vector_store %arg14[%c0_97, %c192], %361 {strides = array<i32>} : memref<8x256xbf16, #tpu.memory_space<vmem>>, vector<8x32xbf16>,
    %363 = vector.extract_strided_slice %199 {offsets = [56, 0], sizes = [8, 128], strides = [1, 1]} : vector<64x128xf32> to vector<8x128xf32>
    %cst_98 = arith.constant dense<0.000000e+00> : vector<8x128xf32>
    %364 = tpu.matmul %361, %195, %cst_98 {dimension_numbers = #tpu.dot_dimension_numbers<[1], [0], [0], [1], [0, 0, 1, 1], [], []>} : vector<8x32xbf16>, vector<32x128xbf16>, vector<8x128xf32> -> vector<8x128xf32>
    %365 = arith.addf %363, %364 : vector<8x128xf32>
    %366 = arith.negf %365 : vector<8x128xf32>
    %367 = math.exp %366 : vector<8x128xf32>
    %cst_99 = arith.constant 1.000000e+00 : f32
    %368 = vector.broadcast %cst_99 : f32 to vector<8x128xf32>
    %369 = arith.addf %368, %367 : vector<8x128xf32>
    %370 = arith.divf %368, %369 : vector<8x128xf32>
    %371 = vector.extract_strided_slice %370 {offsets = [0, 0], sizes = [8, 32], strides = [1, 1]} : vector<8x128xf32> to vector<8x32xf32>
    %372 = vector.extract_strided_slice %370 {offsets = [0, 32], sizes = [8, 32], strides = [1, 1]} : vector<8x128xf32> to vector<8x32xf32>
    %373 = vector.extract_strided_slice %370 {offsets = [0, 64], sizes = [8, 32], strides = [1, 1]} : vector<8x128xf32> to vector<8x32xf32>
    %cst_100 = arith.constant 2.000000e+00 : f32
    %374 = vector.broadcast %cst_100 : f32 to vector<8x32xf32>
    %375 = arith.mulf %374, %373 : vector<8x32xf32>
    %cst_101 = arith.constant 1.000000e+00 : f32
    %376 = vector.broadcast %cst_101 : f32 to vector<8x32xf32>
    %377 = arith.subf %375, %376 : vector<8x32xf32>
    %378 = vector.extract_strided_slice %370 {offsets = [0, 96], sizes = [8, 32], strides = [1, 1]} : vector<8x128xf32> to vector<8x32xf32>
    %379 = arith.mulf %372, %358 : vector<8x32xf32>
    %380 = arith.mulf %371, %377 : vector<8x32xf32>
    %381 = arith.addf %379, %380 : vector<8x32xf32>
    %382 = math.tanh %381 : vector<8x32xf32>
    %383 = arith.mulf %378, %382 : vector<8x32xf32>
    %384 = arith.truncf %383 : vector<8x32xf32> to vector<8x32xbf16>
    %c0_102 = arith.constant 0 : index
    %c224 = arith.constant 224 : index
    %385 = vector.load %arg14[%c0_102, %c224] : memref<8x256xbf16, #tpu.memory_space<vmem>>, vector<8x32xbf16>
    tpu.vector_store %arg14[%c0_102, %c224], %384 {strides = array<i32>} : memref<8x256xbf16, #tpu.memory_space<vmem>>, vector<8x32xbf16>,
    %c0_103 = arith.constant 0 : index
    %c0_104 = arith.constant 0 : index
    %386 = vector.load %arg14[%c0_103, %c0_104] : memref<8x256xbf16, #tpu.memory_space<vmem>>, vector<8x256xbf16>
    %c0_105 = arith.constant 0 : index
    %c0_106 = arith.constant 0 : index
    %387 = vector.load %arg7[%c0_105, %c0_106] : memref<256x32xbf16, #tpu.memory_space<vmem>>, vector<256x32xbf16>
    %cst_107 = arith.constant dense<0.000000e+00> : vector<8x32xf32>
    %388 = tpu.matmul %386, %387, %cst_107 {dimension_numbers = #tpu.dot_dimension_numbers<[1], [0], [0], [1], [0, 0, 1, 1], [], []>} : vector<8x256xbf16>, vector<256x32xbf16>, vector<8x32xf32> -> vector<8x32xf32>
    %c0_108 = arith.constant 0 : index
    %c0_109 = arith.constant 0 : index
    %389 = vector.load %arg8[%c0_108, %c0_109] : memref<1x32xf32, #tpu.memory_space<vmem>>, vector<1x32xf32>
    %390 = vector.broadcast %389 : vector<1x32xf32> to vector<8x32xf32>
    %391 = arith.mulf %388, %390 : vector<8x32xf32>
    %c0_110 = arith.constant 0 : index
    %c0_111 = arith.constant 0 : index
    %392 = vector.load %arg9[%c0_110, %c0_111] : memref<1x32xf32, #tpu.memory_space<vmem>>, vector<1x32xf32>
    %393 = vector.broadcast %392 : vector<1x32xf32> to vector<8x32xf32>
    %394 = arith.addf %391, %393 : vector<8x32xf32>
    %cst_112 = arith.constant 0.000000e+00 : f32
    %395 = vector.broadcast %cst_112 : f32 to vector<8x32xf32>
    %396 = arith.maximumf %394, %395 : vector<8x32xf32>
    %397 = arith.truncf %396 : vector<8x32xf32> to vector<8x32xbf16>
    %c0_113 = arith.constant 0 : index
    %c0_114 = arith.constant 0 : index
    %398 = vector.load %arg10[%c0_113, %c0_114] : memref<32x128xbf16, #tpu.memory_space<vmem>>, vector<32x128xbf16>
    %cst_115 = arith.constant dense<0.000000e+00> : vector<8x128xf32>
    %399 = tpu.matmul %397, %398, %cst_115 {dimension_numbers = #tpu.dot_dimension_numbers<[1], [0], [0], [1], [0, 0, 1, 1], [], []>} : vector<8x32xbf16>, vector<32x128xbf16>, vector<8x128xf32> -> vector<8x128xf32>
    %c0_116 = arith.constant 0 : index
    %c0_117 = arith.constant 0 : index
    %400 = vector.load %arg11[%c0_116, %c0_117] : memref<1x128xf32, #tpu.memory_space<vmem>>, vector<1x128xf32>
    %401 = vector.broadcast %400 : vector<1x128xf32> to vector<8x128xf32>
    %402 = arith.addf %399, %401 : vector<8x128xf32>
    %c0_118 = arith.constant 0 : index
    %c0_119 = arith.constant 0 : index
    %403 = vector.load %arg12[%c0_118, %c0_119] : memref<8x128xf32, #tpu.memory_space<vmem>>, vector<8x128xf32>
    tpu.vector_store %arg12[%c0_118, %c0_119], %402 {strides = array<i32>} : memref<8x128xf32, #tpu.memory_space<vmem>>, vector<8x128xf32>,
    return
  }
}

</mosaic_0001>

<bundles_post_ra>
// kernel: tpu_custom_call.1
= control target key start
LH: loop header
LB: loop body
LE: loop exit
PB: predicated region body
PF: predicated region fallthrough
CT: control target
= control target key end

     0   :  { %vm96_vm0 = vcmask 1041408   ;;  %vm83_vm1 = vcmask 31744   ;;  %v2306_v4 = vmov 0.0   ;;  %vm2307_vm2 = vmmov 0   ;;  %s2806_s0 = inlined_call_operand.vmem [shape: bf16[64,4], index: 0, kind: input, shape index: {}]   ;;  %s2807_s1 = inlined_call_operand.vmem [shape: bf16[4,128], index: 1, kind: input, shape index: {}]   ;;  %s2808_s2 = inlined_call_operand.vmem [shape: bf16[32,128], index: 2, kind: input, shape index: {}]   ;;  %s2809_s3 = inlined_call_operand.vmem [shape: f32[1,128], index: 3, kind: input, shape index: {}]   ;;  %s2810_s4 = inlined_call_operand.vmem [shape: bf16[32,128], index: 4, kind: input, shape index: {}]   ;;  %s2811_s5 = inlined_call_operand.vmem [shape: bf16[32,128], index: 5, kind: input, shape index: {}]   ;;  %s2812_s6 = inlined_call_operand.vmem [shape: f32[1,128], index: 6, kind: input, shape index: {}]   ;;  %s2813_s7 = inlined_call_operand.vmem [shape: bf16[256,32], index: 7, kind: input, shape index: {}]   ;;  %s2814_s8 = inlined_call_operand.vmem [shape: f32[1,32], index: 8, kind: input, shape index: {}]   ;;  %s2815_s9 = inlined_call_operand.vmem [shape: f32[1,32], index: 9, kind: input, shape index: {}]   ;;  %s2816_s10 = inlined_call_operand.vmem [shape: bf16[32,128], index: 10, kind: input, shape index: {}]   ;;  %s2817_s11 = inlined_call_operand.vmem [shape: f32[1,128], index: 11, kind: input, shape index: {}]   ;;  %s2818_s12 = inlined_call_operand.hbm [shape: f32[8,128], index: 12, kind: output, shape index: {}]  }
   0x1   :  { %v51_v0 = vld [vmem:[%s2807_s1] sm:$0x3]  ;;  %v2157_v3 = vld [vmem:[%s2806_s0 + $0x8] sm:$0xff]   ;;  %2016 = vmatprep.subr.bf16.mxu0 %v2306_v4  ;;  %v2159_v6 = vld [vmem:[%s2806_s0 + $0x10] sm:$0xff]   ;;  %2020 = vmatprep.mubr.msk.bf16.mxu0 %vm2307_vm2, %v2306_v4  ;;  %v2308_v9 = vmov 0  }
   0x2   :  { %v2156_v1 = vld [vmem:[%s2806_s0] sm:$0xff]   ;;  %2148 = vmatprep.subr.msk.bf16.mxu1 %vm96_vm0, %v51_v0  ;;  %v98_v2 = vsel %vm96_vm0, %v51_v0, 0  ;;  %v2407_v7 = vld [vmem:[%s2808_s2 + $0x8] sm:$0xff]   ;;  %v2160_v8 = vld [vmem:[%s2806_s0 + $0x18] sm:$0xff]  }
   0x3   :  { %1991 = vmatpush3.bf16.msra.mxu1 %v98_v2  ;;  %1992 = vmatprep.mubr.msk.bf16.mxu1 %vm83_vm1, %v2156_v1  ;;  %v2392_v5 = vld [vmem:[%s2808_s2] sm:$0xff]  }
   0x4   :  { %2000 = vmatprep.subr.bf16.mxu1 %v2306_v4  ;;  %2017 = vmatpush3.bf16.msra.mxu0 %v2392_v5 }
   0x5   :  { %2018 = vmatprep.subr.bf16.mxu0 %v2306_v4 }
   0x6   :  { %1993 = vmatmul.mubr.msk.bf16.vlgmr.msra.gmra.mrb[0].mxu1 %vm83_vm1, %v2157_v3 }
   0x7   :  { %2001 = vmatpush3.bf16.msra.mxu1 %v2392_v5  ;;  %1996 = vmatprep.mubr.msk.bf16.mxu1 %vm83_vm1, %v2159_v6 }
   0x8   :  { %2002 = vmatprep.subr.bf16.mxu1 %v2306_v4  ;;  %2019 = vmatpush3.bf16.msra.mxu0 %v2407_v7 }
   0x9   :  { %2032 = vmatprep.subr.bf16.mxu0 %v2306_v4 }
   0xb   :  { %2003 = vmatpush3.bf16.msra.mxu1 %v2407_v7 }
   0xc   :  { %2008 = vmatprep.subr.bf16.mxu1 %v2306_v4 }
   0xe   :  { %1997 = vmatmul.mubr.msk.bf16.gmra.mrb[4].mxu1 %vm83_vm1, %v2160_v8 }
   0xf   :  { %2004 = vmatprep.mubr.msk.bf16.mxu1 %vm2307_vm2, %v2306_v4 }
  0x16   :  { %2005 = vmatmul.mubr.bf16.vlgmr.msra.gmra.mrb[8].mxu1 %v2308_v9 }
  0x17   :  { %17 = vsyncpa [#allocation5], 0  ;;  %2009 = vmatpush3.bf16.msra.mxu1 %v2392_v5  ;;  %2012 = vmatprep.mubr.msk.bf16.mxu1 %vm2307_vm2, %v2306_v4  ;;  %v1804_v10 = vld [vmem:[%s2809_s3] ss:$0 sm:$0xff]  ;;  %s2309_s3 = smov 64   ;;  %s2310_s16 = smov 32  }
  0x18   :  { %2010 = vmatprep.subr.bf16.mxu1 %v2306_v4  ;;  %vm252_vm3 = vcmask 257024   ;;  %vm177_vm4 = vcmask 261120   ;;  %vm329_vm5 = vcmask 261124   ;;  %vm1062_vm6 = vcmask 519424   ;;  %s2311_s2 = smov 96   ;;  %s2312_s19 = smov [#allocation4]  }
  0x19   :  { %vm1142_vm7 = vcmask 781824   ;;  %vm1216_vm8 = vcmask 1044224   ;;  %s1796_s20 = sshll.u32 %s2312_s19, 4  ;;  %s1797_s20 = int_to_ptr.vmem [resolvable:$true] %s1796_s20 }
  0x1a   :  { %p2287_p1 = scmp.lt.s32.totalorder %s1797_s20, %s1797_s20 }
  0x1b   :  { %2011 = vmatpush3.bf16.msra.mxu1 %v2407_v7 }
  0x1c   :  { %2024 = vmatprep.subr.bf16.mxu1 %v2306_v4 }
  0xd9   :  { %v1994_v11 = vpop.f32.mrb[0].mxu1 }
  0xda   :  { %v2431_v12 = vadd.f32 %v1994_v11, %v1804_v10  ;;  %v134_v13 = vpop.f32.mrb[1].mxu1 }
  0xdb   :  { %v1995_v14 = vpop.f32.mrb[2].mxu1  ;;  %v135_v26 = vadd.f32 %v1804_v10, %v134_v13 }
  0xdc   :  { %v2433_v15 = vadd.f32 %v1995_v14, %v1804_v10  ;;  %v137_v16 = vpop.f32.mrb[3].mxu1 }
  0xdd   :  { %v138_v17 = vadd.f32 %v1804_v10, %v137_v16 }
  0xe1   :  { %v1998_v18 = vpop.f32.mrb[4].mxu1 }
  0xe2   :  { %v2435_v19 = vadd.f32 %v1998_v18, %v1804_v10  ;;  %v150_v20 = vpop.f32.mrb[5].mxu1 }
  0xe3   :  { %v2437_v21 = vadd.f32 %v1804_v10, %v150_v20  ;;  %v1999_v22 = vpop.f32.mrb[6].mxu1 }
  0xe4   :  { %v2439_v23 = vadd.f32 %v1999_v22, %v1804_v10  ;;  %v153_v24 = vpop.f32.mrb[7].mxu1 }
  0xe5   :  { %v2441_v25 = vadd.f32 %v1804_v10, %v153_v24 }
  0xe9   :  { %v215_v27 = vpop.f32.mrb[8].mxu1 }
  0xea   :  { %v221_v28 = vadd.f32 %v215_v27, %v135_v26  ;;  %v2006_v29 = vpop.f32.mrb[9].mxu1 }
  0xeb   :  { %v218_v30 = vpop.f32.mrb[10].mxu1 }
  0xec   :  { %v1815_v31 = vmul.f32 -1.442695, %v221_v28  ;;  %v2007_v32 = vpop.f32.mrb[11].mxu1 }
  0xee   :  { %2186 = vpow2.f32 %v1815_v31 }
  0xf8   :  { %v2187_v33 = vpop.eup %2186 }
  0xf9   :  { %v225_v34 = vadd.f32 1.0, %v2187_v33 }
  0xfb   :  { %2188 = vrcp.f32 %v225_v34 }
 0x105   :  { %v2189_v35 = vpop.eup %2188 }
 0x106   :  { %v228_v36 = vmul.f32 2.0, %v2189_v35  ;;  %v230_v40 = vmul.f32 0.0, %v2189_v35 }
 0x108   :  { %v1816_v37 = vadd.f32 -1.0, %v228_v36 }
 0x10a   :  { %232 = vrot.lane.b32.xlu0 %v1816_v37, %s2309_s3 }
 0x17c   :  { %v233_v38 = vpop.permute.xlu0 %232 }
 0x17d   :  { %v235_v39 = vmul.f32 %v2189_v35, %v233_v38 }
 0x17f   :  { %237 = vrot.lane.b32.xlu0 %v235_v39, %s2310_s16 }
 0x1f1   :  { %v238_v41 = vpop.permute.xlu0 %237 }
 0x1f2   :  { %v240_v42 = vadd.f32 %v238_v41, %v230_v40 }
 0x1f4   :  { %2190 = vtanh.f32 %v240_v42 }
 0x1fe   :  { %v2191_v43 = vpop.eup %2190 }
 0x1ff   :  { %243 = vrot.lane.b32.xlu1 %v2191_v43, %s2309_s3 }
 0x271   :  { %v244_v44 = vpop.permute.xlu1 %243 }
 0x272   :  { %v246_v45 = vmul.f32 %v2189_v35, %v244_v44 }
 0x274   :  { %v247_v46 = vpack.c.bf16 %v246_v45, %v246_v45 }
 0x276   :  { %249 = vrot.lane.b32.xlu1 %v247_v46, %s2310_s16 }
 0x2e8   :  { %v250_v47 = vpop.permute.xlu1 %249 }
 0x2e9   :  { %253 = vst.msk [vmem:[#allocation2] sm:$0xf] %vm252_vm3, %v250_v47  ;;  %2013 = vmatmul.mubr.msk.bf16.vlgmr.msra.gmra.mrb[12].mxu1 %vm177_vm4, %v250_v47 }
 0x2ea   :  { %2025 = vmatpush3.bf16.msra.mxu1 %v2392_v5  ;;  %2028 = vmatprep.mubr.msk.bf16.mxu1 %vm2307_vm2, %v2306_v4 }
 0x2eb   :  { %2026 = vmatprep.subr.bf16.mxu1 %v2306_v4 }
 0x2ee   :  { %2027 = vmatpush3.bf16.msra.mxu1 %v2407_v7 }
 0x2ef   :  { %2040 = vmatprep.subr.bf16.mxu1 %v2306_v4 }
 0x3bc   :  { %v291_v48 = vpop.f32.mrb[12].mxu1 }
 0x3bd   :  { %v297_v49 = vadd.f32 %v291_v48, %v138_v17  ;;  %v2014_v50 = vpop.f32.mrb[13].mxu1 }
 0x3be   :  { %v294_v51 = vpop.f32.mrb[14].mxu1 }
 0x3bf   :  { %v1818_v52 = vmul.f32 -1.442695, %v297_v49  ;;  %v2015_v53 = vpop.f32.mrb[15].mxu1 }
 0x3c1   :  { %2192 = vpow2.f32 %v1818_v52 }
 0x3cb   :  { %v2193_v54 = vpop.eup %2192 }
 0x3cc   :  { %v301_v55 = vadd.f32 1.0, %v2193_v54 }
 0x3ce   :  { %2194 = vrcp.f32 %v301_v55 }
 0x3d8   :  { %v2195_v56 = vpop.eup %2194 }
 0x3d9   :  { %v304_v57 = vmul.f32 2.0, %v2195_v56  ;;  %v306_v61 = vmul.f32 %v2195_v56, %v240_v42 }
 0x3db   :  { %v1819_v58 = vadd.f32 -1.0, %v304_v57 }
 0x3dd   :  { %308 = vrot.lane.b32.xlu0 %v1819_v58, %s2309_s3 }
 0x44f   :  { %v309_v59 = vpop.permute.xlu0 %308 }
 0x450   :  { %v311_v60 = vmul.f32 %v2195_v56, %v309_v59 }
 0x452   :  { %313 = vrot.lane.b32.xlu1 %v311_v60, %s2310_s16 }
 0x4c4   :  { %v314_v62 = vpop.permute.xlu1 %313 }
 0x4c5   :  { %v316_v63 = vadd.f32 %v314_v62, %v306_v61 }
 0x4c7   :  { %2196 = vtanh.f32 %v316_v63 }
 0x4d1   :  { %v2197_v0 = vpop.eup %2196 }
 0x4d2   :  { %319 = vrot.lane.b32.xlu0 %v2197_v0, %s2309_s3 }
 0x544   :  { %v320_v1 = vpop.permute.xlu0 %319 }
 0x545   :  { %v322_v2 = vmul.f32 %v2195_v56, %v320_v1 }
 0x547   :  { %v2458_v3 = vpack.c.bf16 %v322_v2, %v322_v2 }
 0x549   :  { %331 = vrot.lane.b32.xlu1 %v2458_v3, %s2310_s16 }
 0x5bb   :  { %v332_v6 = vpop.permute.xlu1 %331 }
 0x5bc   :  { %2021 = vmatmul.mubr.msk.bf16.vlgmr.msra.gmra.mrb[0].mxu0 %vm177_vm4, %v332_v6 }
 0x5bd   :  { %2033 = vmatpush3.bf16.msra.mxu0 %v2392_v5  ;;  %2036 = vmatprep.mubr.msk.bf16.mxu0 %vm2307_vm2, %v2306_v4 }
 0x5be   :  { %2034 = vmatprep.subr.bf16.mxu0 %v2306_v4 }
 0x5c1   :  { %2035 = vmatpush3.bf16.msra.mxu0 %v2407_v7 }
 0x5c2   :  { %2048 = vmatprep.subr.bf16.mxu0 %v2306_v4 }
 0x68f   :  { %v370_v8 = vpop.f32.mrb[0].mxu0 }
 0x690   :  { %v376_v10 = vadd.f32 %v370_v8, %v2431_v12  ;;  %v2022_v11 = vpop.f32.mrb[1].mxu0 }
 0x691   :  { %v373_v13 = vpop.f32.mrb[2].mxu0 }
 0x692   :  { %v1821_v14 = vmul.f32 -1.442695, %v376_v10  ;;  %v2023_v16 = vpop.f32.mrb[3].mxu0 }
 0x694   :  { %2198 = vpow2.f32 %v1821_v14 }
 0x69e   :  { %v2199_v17 = vpop.eup %2198 }
 0x69f   :  { %v380_v18 = vadd.f32 1.0, %v2199_v17 }
 0x6a1   :  { %2200 = vrcp.f32 %v380_v18 }
 0x6ab   :  { %v2201_v20 = vpop.eup %2200 }
 0x6ac   :  { %v383_v22 = vmul.f32 2.0, %v2201_v20  ;;  %v385_v28 = vmul.f32 %v2201_v20, %v316_v63 }
 0x6ae   :  { %v1822_v24 = vadd.f32 -1.0, %v383_v22 }
 0x6b0   :  { %387 = vrot.lane.b32.xlu0 %v1822_v24, %s2309_s3 }
 0x722   :  { %v388_v26 = vpop.permute.xlu0 %387 }
 0x723   :  { %v390_v27 = vmul.f32 %v2201_v20, %v388_v26 }
 0x725   :  { %392 = vrot.lane.b32.xlu1 %v390_v27, %s2310_s16 }
 0x797   :  { %v393_v29 = vpop.permute.xlu1 %392 }
 0x798   :  { %v395_v12 = vadd.f32 %v393_v29, %v385_v28 }
 0x79a   :  { %2202 = vtanh.f32 %v395_v12 }
 0x7a4   :  { %v2203_v30 = vpop.eup %2202 }
 0x7a5   :  { %398 = vrot.lane.b32.xlu0 %v2203_v30, %s2309_s3 }
 0x817   :  { %v399_v31 = vpop.permute.xlu0 %398 }
 0x818   :  { %v401_v32 = vmul.f32 %v2201_v20, %v399_v31 }
 0x81a   :  { %v402_v33 = vpack.c.bf16 %v401_v32, %v401_v32 }
 0x81c   :  { %404 = vrot.lane.b32.xlu1 %v402_v33, %s2310_s16 }
 0x88e   :  { %v405_v34 = vpop.permute.xlu1 %404 }
 0x88f   :  { %407 = vst.msk [vmem:[#allocation2 + $0x8] sm:$0xf] %vm252_vm3, %v405_v34  ;;  %2029 = vmatmul.mubr.msk.bf16.vlgmr.msra.gmra.mrb[16].mxu1 %vm177_vm4, %v405_v34 }
 0x890   :  { %2041 = vmatpush3.bf16.msra.mxu1 %v2392_v5  ;;  %2044 = vmatprep.mubr.msk.bf16.mxu1 %vm2307_vm2, %v2306_v4 }
 0x891   :  { %2042 = vmatprep.subr.bf16.mxu1 %v2306_v4 }
 0x894   :  { %2043 = vmatpush3.bf16.msra.mxu1 %v2407_v7 }
 0x895   :  { %2056 = vmatprep.subr.bf16.mxu1 %v2306_v4 }
 0x962   :  { %v445_v35 = vpop.f32.mrb[16].mxu1 }
 0x963   :  { %v451_v36 = vadd.f32 %v445_v35, %v2433_v15  ;;  %v2030_v37 = vpop.f32.mrb[17].mxu1 }
 0x964   :  { %v448_v38 = vpop.f32.mrb[18].mxu1 }
 0x965   :  { %v1824_v39 = vmul.f32 -1.442695, %v451_v36  ;;  %v2031_v40 = vpop.f32.mrb[19].mxu1 }
 0x967   :  { %2204 = vpow2.f32 %v1824_v39 }
 0x971   :  { %v2205_v41 = vpop.eup %2204 }
 0x972   :  { %v455_v42 = vadd.f32 1.0, %v2205_v41 }
 0x974   :  { %2206 = vrcp.f32 %v455_v42 }
 0x97e   :  { %v2207_v43 = vpop.eup %2206 }
 0x97f   :  { %v458_v44 = vmul.f32 2.0, %v2207_v43  ;;  %v460_v48 = vmul.f32 %v2207_v43, %v395_v12 }
 0x981   :  { %v1825_v45 = vadd.f32 -1.0, %v458_v44 }
 0x983   :  { %462 = vrot.lane.b32.xlu0 %v1825_v45, %s2309_s3 }
 0x9f5   :  { %v463_v46 = vpop.permute.xlu0 %462 }
 0x9f6   :  { %v465_v47 = vmul.f32 %v2207_v43, %v463_v46 }
 0x9f8   :  { %467 = vrot.lane.b32.xlu1 %v465_v47, %s2310_s16 }
 0xa6a   :  { %v468_v49 = vpop.permute.xlu1 %467 }
 0xa6b   :  { %v470_v15 = vadd.f32 %v468_v49, %v460_v48 }
 0xa6d   :  { %2208 = vtanh.f32 %v470_v15 }
 0xa77   :  { %v2209_v50 = vpop.eup %2208 }
 0xa78   :  { %473 = vrot.lane.b32.xlu0 %v2209_v50, %s2309_s3 }
 0xaea   :  { %v474_v51 = vpop.permute.xlu0 %473 }
 0xaeb   :  { %v476_v52 = vmul.f32 %v2207_v43, %v474_v51  ;;  %v325_v51 = vrot.slane %v2458_v3, 4  ;;  %v2163_v3 = vld [vmem:[%s2810_s4 + $0x8] sm:$0xff]  }
 0xaed   :  { %v2486_v53 = vpack.c.bf16 %v476_v52, %v476_v52 }
 0xaef   :  { %484 = vrot.lane.b32.xlu1 %v2486_v53, %s2310_s16 }
 0xb61   :  { %v485_v54 = vpop.permute.xlu1 %484 }
 0xb62   :  { %2037 = vmatmul.mubr.msk.bf16.vlgmr.msra.gmra.mrb[4].mxu0 %vm177_vm4, %v485_v54 }
 0xb63   :  { %2049 = vmatpush3.bf16.msra.mxu0 %v2392_v5  ;;  %2052 = vmatprep.mubr.msk.bf16.mxu0 %vm2307_vm2, %v2306_v4 }
 0xb64   :  { %2050 = vmatprep.subr.bf16.mxu0 %v2306_v4 }
 0xb67   :  { %2051 = vmatpush3.bf16.msra.mxu0 %v2407_v7 }
 0xc35   :  { %v523_v55 = vpop.f32.mrb[4].mxu0 }
 0xc36   :  { %v529_v56 = vadd.f32 %v523_v55, %v2437_v21  ;;  %v2038_v57 = vpop.f32.mrb[5].mxu0  ;;  %v2162_v55 = vld [vmem:[%s2810_s4] sm:$0xff]  }
 0xc37   :  { %v526_v58 = vpop.f32.mrb[6].mxu0  ;;  %2064 = vmatprep.subr.bf16.mxu0 %v2162_v55 }
 0xc38   :  { %v1827_v59 = vmul.f32 -1.442695, %v529_v56  ;;  %v2039_v60 = vpop.f32.mrb[7].mxu0 }
 0xc3a   :  { %2210 = vpow2.f32 %v1827_v59  ;;  %v479_v59 = vrot.slane %v2486_v53, 4  ;;  %v2551_v53 = vld [vmem:[%s2811_s5 + $0x8] sm:$0xff]  }
 0xc44   :  { %v2211_v61 = vpop.eup %2210 }
 0xc45   :  { %v533_v62 = vadd.f32 1.0, %v2211_v61 }
 0xc47   :  { %2212 = vrcp.f32 %v533_v62 }
 0xc51   :  { %v2213_v63 = vpop.eup %2212 }
 0xc52   :  { %v536_v0 = vmul.f32 2.0, %v2213_v63  ;;  %v538_v8 = vmul.f32 %v2213_v63, %v470_v15 }
 0xc54   :  { %v1828_v1 = vadd.f32 -1.0, %v536_v0 }
 0xc56   :  { %540 = vrot.lane.b32.xlu0 %v1828_v1, %s2309_s3  ;;  %v2543_v1 = vld [vmem:[%s2811_s5] sm:$0xff]  }
 0xcc8   :  { %v541_v2 = vpop.permute.xlu0 %540 }
 0xcc9   :  { %v543_v6 = vmul.f32 %v2213_v63, %v541_v2 }
 0xccb   :  { %545 = vrot.lane.b32.xlu1 %v543_v6, %s2310_s16 }
 0xd3d   :  { %v546_v10 = vpop.permute.xlu1 %545 }
 0xd3e   :  { %v548_v21 = vadd.f32 %v546_v10, %v538_v8 }
 0xd40   :  { %2214 = vtanh.f32 %v548_v21 }
 0xd4a   :  { %v2215_v11 = vpop.eup %2214 }
 0xd4b   :  { %551 = vrot.lane.b32.xlu0 %v2215_v11, %s2309_s3 }
 0xdbd   :  { %v552_v13 = vpop.permute.xlu0 %551 }
 0xdbe   :  { %v554_v14 = vmul.f32 %v2213_v63, %v552_v13 }
 0xdc0   :  { %v555_v16 = vpack.c.bf16 %v554_v14, %v554_v14 }
 0xdc2   :  { %557 = vrot.lane.b32.xlu1 %v555_v16, %s2310_s16 }
 0xe34   :  { %v558_v17 = vpop.permute.xlu1 %557 }
 0xe35   :  { %560 = vst.msk [vmem:[#allocation2 + $0x10] sm:$0xf] %vm252_vm3, %v558_v17  ;;  %2045 = vmatmul.mubr.msk.bf16.vlgmr.msra.gmra.mrb[20].mxu1 %vm177_vm4, %v558_v17  ;;  %v2580_v17 = vld [vmem:[%s2812_s6] ss:$0 sm:$0xff] }
 0xe36   :  { %2057 = vmatpush3.bf16.msra.mxu1 %v2392_v5  ;;  %2060 = vmatprep.mubr.msk.bf16.mxu1 %vm2307_vm2, %v2306_v4 }
 0xe37   :  { %2058 = vmatprep.subr.bf16.mxu1 %v2306_v4 }
 0xe3a   :  { %2059 = vmatpush3.bf16.msra.mxu1 %v2407_v7 }
 0xe3b   :  { %2076 = vmatprep.subr.bf16.mxu1 %v2306_v4 }
 0xf08   :  { %v598_v18 = vpop.f32.mrb[20].mxu1 }
 0xf09   :  { %v604_v20 = vadd.f32 %v598_v18, %v2441_v25  ;;  %v2046_v22 = vpop.f32.mrb[21].mxu1 }
 0xf0a   :  { %v601_v24 = vpop.f32.mrb[22].mxu1 }
 0xf0b   :  { %v1830_v26 = vmul.f32 -1.442695, %v604_v20  ;;  %v2047_v27 = vpop.f32.mrb[23].mxu1 }
 0xf0d   :  { %2216 = vpow2.f32 %v1830_v26 }
 0xf17   :  { %v2217_v28 = vpop.eup %2216 }
 0xf18   :  { %v608_v29 = vadd.f32 1.0, %v2217_v28 }
 0xf1a   :  { %2218 = vrcp.f32 %v608_v29 }
 0xf24   :  { %v2219_v5 = vpop.eup %2218 }
 0xf25   :  { %v611_v12 = vmul.f32 2.0, %v2219_v5  ;;  %v613_v32 = vmul.f32 %v2219_v5, %v548_v21 }
 0xf27   :  { %v1831_v30 = vadd.f32 -1.0, %v611_v12 }
 0xf29   :  { %615 = vrot.lane.b32.xlu0 %v1831_v30, %s2309_s3 }
 0xf9b   :  { %v616_v31 = vpop.permute.xlu0 %615 }
 0xf9c   :  { %v618_v7 = vmul.f32 %v2219_v5, %v616_v31 }
 0xf9e   :  { %620 = vrot.lane.b32.xlu1 %v618_v7, %s2310_s16 }
0x1010   :  { %v621_v33 = vpop.permute.xlu1 %620 }
0x1011   :  { %v623_v25 = vadd.f32 %v621_v33, %v613_v32 }
0x1013   :  { %2220 = vtanh.f32 %v623_v25 }
0x101d   :  { %v2221_v34 = vpop.eup %2220 }
0x101e   :  { %626 = vrot.lane.b32.xlu0 %v2221_v34, %s2309_s3 }
0x1090   :  { %v627_v35 = vpop.permute.xlu0 %626 }
0x1091   :  { %v629_v36 = vmul.f32 %v2219_v5, %v627_v35 }
0x1093   :  { %v2513_v37 = vpack.c.bf16 %v629_v36, %v629_v36 }
0x1095   :  { %637 = vrot.lane.b32.xlu1 %v2513_v37, %s2310_s16 }
0x1107   :  { %v638_v38 = vpop.permute.xlu1 %637 }
0x1108   :  { %2053 = vmatmul.mubr.msk.bf16.vlgmr.msra.gmra.mrb[8].mxu0 %vm177_vm4, %v638_v38 }
0x1109   :  { %2065 = vmatpush3.bf16.msra.mxu0 %v2162_v55 }
0x110a   :  { %2066 = vmatprep.subr.bf16.mxu0 %v2163_v3 }
0x110d   :  { %2067 = vmatpush3.bf16.msra.mxu0 %v2163_v3 }
0x110e   :  { %2092 = vmatprep.subr.bf16.mxu0 %v2306_v4 }
0x11db   :  { %v676_v39 = vpop.f32.mrb[8].mxu0 }
0x11dc   :  { %v682_v40 = vadd.f32 %v676_v39, %v2435_v19  ;;  %v2054_v41 = vpop.f32.mrb[9].mxu0 }
0x11dd   :  { %v679_v42 = vpop.f32.mrb[10].mxu0 }
0x11de   :  { %v1833_v43 = vmul.f32 -1.442695, %v682_v40  ;;  %v2055_v44 = vpop.f32.mrb[11].mxu0 }
0x11e0   :  { %2222 = vpow2.f32 %v1833_v43 }
0x11ea   :  { %v2223_v45 = vpop.eup %2222 }
0x11eb   :  { %v686_v46 = vadd.f32 1.0, %v2223_v45 }
0x11ed   :  { %2224 = vrcp.f32 %v686_v46 }
0x11f7   :  { %v2225_v47 = vpop.eup %2224 }
0x11f8   :  { %v689_v48 = vmul.f32 2.0, %v2225_v47  ;;  %v691_v19 = vmul.f32 %v2225_v47, %v623_v25 }
0x11fa   :  { %v1834_v49 = vadd.f32 -1.0, %v689_v48 }
0x11fc   :  { %693 = vrot.lane.b32.xlu0 %v1834_v49, %s2309_s3 }
0x126e   :  { %v694_v15 = vpop.permute.xlu0 %693 }
0x126f   :  { %v696_v50 = vmul.f32 %v2225_v47, %v694_v15 }
0x1271   :  { %698 = vrot.lane.b32.xlu1 %v696_v50, %s2310_s16 }
0x1275   :  { %326 = vrot.lane.b32.xlu1 %v325_v51, %s2310_s16  ;;  %v632_v51 = vrot.slane %v2513_v37, 4 }
0x12e3   :  { %v699_v52 = vpop.permute.xlu1 %698 }
0x12e4   :  { %v2523_v54 = vadd.f32 %v699_v52, %v691_v19 }
0x12e6   :  { %2226 = vtanh.f32 %v2523_v54 }
0x12e7   :  { %v327_v56 = vpop.permute.xlu1 %326 }
0x12e8   :  { %330 = vst.msk [vmem:[#allocation2] sm:$0xf0] %vm329_vm5, %v327_v56 }
0x12ef   :  { %v790_v57 = vld [vmem:[#allocation2] sm:$0xff] }
0x12f0   :  { %v2227_v58 = vpop.eup %2226  ;;  %2068 = vmatprep.mubr.msk.bf16.mxu0 %vm177_vm4, %v790_v57 }
0x12f1   :  { %704 = vrot.lane.b32.xlu0 %v2227_v58, %s2309_s3 }
0x12f5   :  { %480 = vrot.lane.b32.xlu0 %v479_v59, %s2310_s16 }
0x1363   :  { %v705_v60 = vpop.permute.xlu0 %704 }
0x1364   :  { %v707_v61 = vmul.f32 %v2225_v47, %v705_v60 }
0x1366   :  { %v708_v62 = vpack.c.bf16 %v707_v61, %v707_v61 }
0x1367   :  { %v481_v63 = vpop.permute.xlu0 %480 }
0x1368   :  { %483 = vst.msk [vmem:[#allocation2 + $0x8] sm:$0xf0] %vm329_vm5, %v481_v63  ;;  %710 = vrot.lane.b32.xlu1 %v708_v62, %s2310_s16 }
0x136f   :  { %v791_v0 = vld [vmem:[#allocation2 + $0x8] sm:$0xff] }
0x1370   :  { %2069 = vmatmul.mubr.msk.bf16.vlgmr.msra.gmra.mrb[12].mxu0 %vm177_vm4, %v791_v0 }
0x1371   :  { %2093 = vmatpush3.bf16.msra.mxu0 %v2543_v1 }
0x1372   :  { %2094 = vmatprep.subr.bf16.mxu0 %v2306_v4 }
0x1375   :  { %2095 = vmatpush3.bf16.msra.mxu0 %v2551_v53 }
0x1376   :  { %2108 = vmatprep.subr.bf16.mxu0 %v2306_v4 }
0x13da   :  { %v711_v2 = vpop.permute.xlu1 %710 }
0x13db   :  { %713 = vst.msk [vmem:[#allocation2 + $0x18] sm:$0xf] %vm252_vm3, %v711_v2  ;;  %2061 = vmatmul.mubr.msk.bf16.vlgmr.msra.gmra.mrb[24].mxu1 %vm177_vm4, %v711_v2 }
0x13dc   :  { %2077 = vmatpush3.bf16.msra.mxu1 %v2543_v1  ;;  %2080 = vmatprep.mubr.msk.bf16.mxu1 %vm2307_vm2, %v2306_v4 }
0x13dd   :  { %2078 = vmatprep.subr.bf16.mxu1 %v2306_v4 }
0x13e0   :  { %2079 = vmatpush3.bf16.msra.mxu1 %v2551_v53 }
0x13e1   :  { %2084 = vmatprep.subr.bf16.mxu1 %v2306_v4 }
0x13e3   :  { %2081 = vmatmul.mubr.bf16.vlgmr.msra.gmra.mrb[28].mxu1 %v2308_v9 }
0x13e4   :  { %2085 = vmatpush3.bf16.msra.mxu1 %v2543_v1  ;;  %2088 = vmatprep.mubr.msk.bf16.mxu1 %vm2307_vm2, %v2306_v4 }
0x13e5   :  { %2086 = vmatprep.subr.bf16.mxu1 %v2306_v4 }
0x13e8   :  { %2087 = vmatpush3.bf16.msra.mxu1 %v2551_v53 }
0x13e9   :  { %2100 = vmatprep.subr.bf16.mxu1 %v2306_v4 }
0x1443   :  { %v2570_v6 = vpop.f32.mrb[12].mxu0 }
0x1444   :  { %v867_v8 = vpop.f32.mrb[13].mxu0 }
0x1445   :  { %v2572_v10 = vpop.f32.mrb[14].mxu0  ;;  %v868_v18 = vadd.f32 %v2580_v17, %v867_v8 }
0x1446   :  { %v2574_v21 = vpop.f32.mrb[15].mxu0 }
0x1447   :  { %v871_v55 = vadd.f32 %v2580_v17, %v2574_v21 }
0x14ae   :  { %v751_v11 = vpop.f32.mrb[24].mxu1 }
0x14af   :  { %v757_v9 = vadd.f32 %v751_v11, %v2439_v23  ;;  %v2062_v13 = vpop.f32.mrb[25].mxu1 }
0x14b0   :  { %v754_v14 = vpop.f32.mrb[26].mxu1 }
0x14b1   :  { %v2063_v16 = vpop.f32.mrb[27].mxu1  ;;  %v1836_v32 = vmul.f32 -1.442695, %v757_v9 }
0x14b6   :  { %v944_v20 = vpop.f32.mrb[28].mxu1 }
0x14b7   :  { %v950_v22 = vadd.f32 %v944_v20, %v868_v18  ;;  %v2082_v24 = vpop.f32.mrb[29].mxu1 }
0x14b8   :  { %v947_v26 = vpop.f32.mrb[30].mxu1 }
0x14b9   :  { %v1847_v27 = vmul.f32 -1.442695, %v950_v22  ;;  %v2083_v28 = vpop.f32.mrb[31].mxu1 }
0x14bb   :  { %2228 = vpow2.f32 %v1847_v27 }
0x14c5   :  { %v2229_v29 = vpop.eup %2228 }
0x14c6   :  { %v954_v5 = vadd.f32 1.0, %v2229_v29 }
0x14c8   :  { %2230 = vrcp.f32 %v954_v5 }
0x14c9   :  { %2232 = vpow2.f32 %v1836_v32 }
0x14d2   :  { %v2231_v23 = vpop.eup %2230 }
0x14d3   :  { %v957_v12 = vmul.f32 2.0, %v2231_v23  ;;  %v2233_v33 = vpop.eup %2232  ;;  %v959_v34 = vmul.f32 0.0, %v2231_v23 }
0x14d4   :  { %v761_v25 = vadd.f32 1.0, %v2233_v33 }
0x14d5   :  { %v1848_v30 = vadd.f32 -1.0, %v957_v12 }
0x14d6   :  { %2234 = vrcp.f32 %v761_v25 }
0x14d7   :  { %961 = vrot.lane.b32.xlu0 %v1848_v30, %s2309_s3  ;;  %v876_v30 = vadd.f32 %v2570_v6, %v2580_v17 }
0x14e0   :  { %v2235_v38 = vpop.eup %2234 }
0x14e1   :  { %v764_v39 = vmul.f32 2.0, %v2235_v38  ;;  %v766_v48 = vmul.f32 %v2235_v38, %v2523_v54 }
0x14e3   :  { %v1837_v41 = vadd.f32 -1.0, %v764_v39 }
0x1549   :  { %v962_v31 = vpop.permute.xlu0 %961 }
0x154a   :  { %v964_v7 = vmul.f32 %v2231_v23, %v962_v31 }
0x154c   :  { %966 = vrot.lane.b32.xlu1 %v964_v7, %s2310_s16 }
0x15be   :  { %v967_v35 = vpop.permute.xlu1 %966 }
0x15bf   :  { %v969_v36 = vadd.f32 %v967_v35, %v959_v34 }
0x15c1   :  { %2236 = vtanh.f32 %v969_v36 }
0x15cb   :  { %v2237_v40 = vpop.eup %2236 }
0x15cc   :  { %972 = vrot.lane.b32.xlu0 %v2237_v40, %s2309_s3 }
0x15d0   :  { %768 = vrot.lane.b32.xlu0 %v1837_v41, %s2309_s3 }
0x163e   :  { %v973_v42 = vpop.permute.xlu0 %972 }
0x163f   :  { %v975_v43 = vmul.f32 %v2231_v23, %v973_v42 }
0x1641   :  { %v2587_v44 = vpack.c.bf16 %v975_v43, %v975_v43 }
0x1642   :  { %v769_v45 = vpop.permute.xlu0 %768 }
0x1643   :  { %v771_v46 = vmul.f32 %v2235_v38, %v769_v45  ;;  %984 = vrot.lane.b32.xlu1 %v2587_v44, %s2310_s16 }
0x1645   :  { %773 = vrot.lane.b32.xlu0 %v771_v46, %s2310_s16 }
0x16b5   :  { %v985_v47 = vpop.permute.xlu1 %984 }
0x16b6   :  { %2089 = vmatmul.mubr.msk.bf16.vlgmr.msra.gmra.mrb[32].mxu1 %vm177_vm4, %v985_v47 }
0x16b7   :  { %v774_v49 = vpop.permute.xlu0 %773  ;;  %2101 = vmatpush3.bf16.msra.mxu1 %v2543_v1  ;;  %2104 = vmatprep.mubr.msk.bf16.mxu1 %vm2307_vm2, %v2306_v4 }
0x16b8   :  { %v776_v15 = vadd.f32 %v774_v49, %v766_v48  ;;  %2102 = vmatprep.subr.bf16.mxu1 %v2306_v4 }
0x16ba   :  { %2238 = vtanh.f32 %v776_v15 }
0x16bb   :  { %2103 = vmatpush3.bf16.msra.mxu1 %v2551_v53 }
0x16bc   :  { %2116 = vmatprep.subr.bf16.mxu1 %v2306_v4 }
0x16c4   :  { %v2239_v50 = vpop.eup %2238 }
0x16c5   :  { %779 = vrot.lane.b32.xlu0 %v2239_v50, %s2309_s3  ;;  %v879_v50 = vadd.f32 %v2572_v10, %v2580_v17 }
0x16c9   :  { %633 = vrot.lane.b32.xlu0 %v632_v51, %s2310_s16 }
0x1737   :  { %v780_v19 = vpop.permute.xlu0 %779 }
0x1738   :  { %v782_v13 = vmul.f32 %v2235_v38, %v780_v19 }
0x173a   :  { %v783_v14 = vpack.c.bf16 %v782_v13, %v782_v13 }
0x173b   :  { %v634_v52 = vpop.permute.xlu0 %633 }
0x173c   :  { %636 = vst.msk [vmem:[#allocation2 + $0x10] sm:$0xf0] %vm329_vm5, %v634_v52  ;;  %v785_v18 = vrot.slane %v783_v14, 4 }
0x1743   :  { %v792_v54 = vld [vmem:[#allocation2 + $0x10] sm:$0xff] }
0x1744   :  { %2072 = vmatprep.mubr.msk.bf16.mxu0 %vm177_vm4, %v792_v54 }
0x1789   :  { %v1023_v56 = vpop.f32.mrb[32].mxu1 }
0x178a   :  { %v1029_v3 = vadd.f32 %v1023_v56, %v871_v55  ;;  %v2090_v57 = vpop.f32.mrb[33].mxu1 }
0x178b   :  { %v1026_v58 = vpop.f32.mrb[34].mxu1 }
0x178c   :  { %v1851_v59 = vmul.f32 -1.442695, %v1029_v3  ;;  %v2091_v60 = vpop.f32.mrb[35].mxu1 }
0x178e   :  { %2240 = vpow2.f32 %v1851_v59 }
0x1798   :  { %v2241_v37 = vpop.eup %2240 }
0x1799   :  { %v1033_v61 = vadd.f32 1.0, %v2241_v37 }
0x179b   :  { %2242 = vrcp.f32 %v1033_v61 }
0x17a5   :  { %v2243_v62 = vpop.eup %2242 }
0x17a6   :  { %v1036_v63 = vmul.f32 2.0, %v2243_v62  ;;  %v1038_v21 = vmul.f32 %v2243_v62, %v969_v36 }
0x17a8   :  { %v1852_v0 = vadd.f32 -1.0, %v1036_v63 }
0x17aa   :  { %1040 = vrot.lane.b32.xlu1 %v1852_v0, %s2309_s3 }
0x181c   :  { %v1041_v2 = vpop.permute.xlu1 %1040 }
0x181d   :  { %v1043_v8 = vmul.f32 %v2243_v62, %v1041_v2 }
0x181f   :  { %1045 = vrot.lane.b32.xlu1 %v1043_v8, %s2310_s16 }
0x1891   :  { %v1046_v11 = vpop.permute.xlu1 %1045 }
0x1892   :  { %v1048_v9 = vadd.f32 %v1046_v11, %v1038_v21 }
0x1894   :  { %2244 = vtanh.f32 %v1048_v9 }
0x189e   :  { %v2245_v16 = vpop.eup %2244 }
0x189f   :  { %1051 = vrot.lane.b32.xlu1 %v2245_v16, %s2309_s3 }
0x18a3   :  { %786 = vrot.lane.b32.xlu1 %v785_v18, %s2310_s16 }
0x1911   :  { %v1052_v20 = vpop.permute.xlu1 %1051 }
0x1912   :  { %v1054_v22 = vmul.f32 %v2243_v62, %v1052_v20 }
0x1914   :  { %v2611_v24 = vpack.c.bf16 %v1054_v22, %v1054_v22 }
0x1915   :  { %v787_v26 = vpop.permute.xlu1 %786 }
0x1916   :  { %789 = vst.msk [vmem:[#allocation2 + $0x18] sm:$0xf0] %vm329_vm5, %v787_v26  ;;  %1064 = vrot.lane.b32.xlu0 %v2611_v24, %s2310_s16 }
0x191d   :  { %v793_v27 = vld [vmem:[#allocation2 + $0x18] sm:$0xff] }
0x191e   :  { %2073 = vmatmul.mubr.msk.bf16.gmra.mrb[16].mxu0 %vm177_vm4, %v793_v27 }
0x191f   :  { %2096 = vmatprep.mubr.msk.bf16.mxu0 %vm2307_vm2, %v2306_v4 }
0x1988   :  { %v1065_v28 = vpop.permute.xlu0 %1064 }
0x1989   :  { %2097 = vmatmul.mubr.msk.bf16.vlgmr.msra.gmra.mrb[20].mxu0 %vm177_vm4, %v1065_v28 }
0x198a   :  { %2109 = vmatpush3.bf16.msra.mxu0 %v2543_v1  ;;  %2112 = vmatprep.mubr.msk.bf16.mxu0 %vm2307_vm2, %v2306_v4 }
0x198b   :  { %2110 = vmatprep.subr.bf16.mxu0 %v2306_v4 }
0x198e   :  { %2111 = vmatpush3.bf16.msra.mxu0 %v2551_v53 }
0x198f   :  { %2124 = vmatprep.subr.bf16.mxu0 %v2306_v4 }
0x19f1   :  { %v2626_v29 = vpop.f32.mrb[16].mxu0 }
0x19f2   :  { %v2628_v5 = vpop.f32.mrb[17].mxu0 }
0x19f3   :  { %v2630_v23 = vpop.f32.mrb[18].mxu0 }
0x19f4   :  { %v2632_v12 = vpop.f32.mrb[19].mxu0 }
0x1a5c   :  { %v1103_v31 = vpop.f32.mrb[20].mxu0 }
0x1a5d   :  { %v1109_v7 = vadd.f32 %v1103_v31, %v876_v30  ;;  %v2098_v32 = vpop.f32.mrb[21].mxu0 }
0x1a5e   :  { %v1106_v33 = vpop.f32.mrb[22].mxu0 }
0x1a5f   :  { %v1855_v25 = vmul.f32 -1.442695, %v1109_v7  ;;  %v2099_v34 = vpop.f32.mrb[23].mxu0 }
0x1a61   :  { %2246 = vpow2.f32 %v1855_v25 }
0x1a6b   :  { %v2247_v35 = vpop.eup %2246 }
0x1a6c   :  { %v1113_v36 = vadd.f32 1.0, %v2247_v35 }
0x1a6e   :  { %2248 = vrcp.f32 %v1113_v36 }
0x1a78   :  { %v2249_v38 = vpop.eup %2248 }
0x1a79   :  { %v1116_v39 = vmul.f32 2.0, %v2249_v38  ;;  %v1118_v6 = vmul.f32 %v2249_v38, %v1048_v9  ;;  %v884_v9 = vadd.f32 %v2580_v17, %v2628_v5 }
0x1a7b   :  { %v1856_v40 = vadd.f32 -1.0, %v1116_v39 }
0x1a7d   :  { %1120 = vrot.lane.b32.xlu1 %v1856_v40, %s2309_s3  ;;  %v887_v40 = vadd.f32 %v2580_v17, %v2632_v12 }
0x1aef   :  { %v1121_v41 = vpop.permute.xlu1 %1120 }
0x1af0   :  { %v1123_v42 = vmul.f32 %v2249_v38, %v1121_v41 }
0x1af2   :  { %1125 = vrot.lane.b32.xlu0 %v1123_v42, %s2310_s16 }
0x1b64   :  { %v1126_v43 = vpop.permute.xlu0 %1125 }
0x1b65   :  { %v1128_v45 = vadd.f32 %v1126_v43, %v1118_v6 }
0x1b67   :  { %2250 = vtanh.f32 %v1128_v45 }
0x1b71   :  { %v2251_v46 = vpop.eup %2250 }
0x1b72   :  { %1131 = vrot.lane.b32.xlu1 %v2251_v46, %s2309_s3 }
0x1be4   :  { %v1132_v47 = vpop.permute.xlu1 %1131 }
0x1be5   :  { %v1134_v48 = vmul.f32 %v2249_v38, %v1132_v47 }
0x1be7   :  { %v2639_v49 = vpack.c.bf16 %v1134_v48, %v1134_v48 }
0x1be9   :  { %1144 = vrot.lane.b32.xlu0 %v2639_v49, %s2310_s16 }
0x1c5b   :  { %v1145_v15 = vpop.permute.xlu0 %1144 }
0x1c5c   :  { %2105 = vmatmul.mubr.msk.bf16.vlgmr.msra.gmra.mrb[36].mxu1 %vm177_vm4, %v1145_v15 }
0x1c5d   :  { %2117 = vmatpush3.bf16.msra.mxu1 %v2543_v1  ;;  %2120 = vmatprep.mubr.msk.bf16.mxu1 %vm2307_vm2, %v2306_v4 }
0x1c5e   :  { %2118 = vmatprep.subr.bf16.mxu1 %v2306_v4 }
0x1c61   :  { %2119 = vmatpush3.bf16.msra.mxu1 %v2551_v53 }
0x1c62   :  { %2132 = vmatprep.subr.bf16.mxu1 %v2306_v4 }
0x1d2f   :  { %v1183_v51 = vpop.f32.mrb[36].mxu1 }
0x1d30   :  { %v1189_v19 = vadd.f32 %v1183_v51, %v879_v50  ;;  %v2106_v52 = vpop.f32.mrb[37].mxu1 }
0x1d31   :  { %v1186_v54 = vpop.f32.mrb[38].mxu1 }
0x1d32   :  { %v1859_v55 = vmul.f32 -1.442695, %v1189_v19  ;;  %v2107_v56 = vpop.f32.mrb[39].mxu1 }
0x1d34   :  { %2252 = vpow2.f32 %v1859_v55 }
0x1d3e   :  { %v2253_v3 = vpop.eup %2252 }
0x1d3f   :  { %v1193_v57 = vadd.f32 1.0, %v2253_v3 }
0x1d41   :  { %2254 = vrcp.f32 %v1193_v57 }
0x1d4b   :  { %v2255_v58 = vpop.eup %2254 }
0x1d4c   :  { %v1196_v59 = vmul.f32 2.0, %v2255_v58  ;;  %v1198_v10 = vmul.f32 %v2255_v58, %v1128_v45 }
0x1d4e   :  { %v1860_v60 = vadd.f32 -1.0, %v1196_v59 }
0x1d50   :  { %1200 = vrot.lane.b32.xlu1 %v1860_v60, %s2309_s3 }
0x1dc2   :  { %v1201_v37 = vpop.permute.xlu1 %1200 }
0x1dc3   :  { %v1203_v61 = vmul.f32 %v2255_v58, %v1201_v37 }
0x1dc5   :  { %1205 = vrot.lane.b32.xlu0 %v1203_v61, %s2310_s16 }
0x1e37   :  { %v1206_v62 = vpop.permute.xlu0 %1205 }
0x1e38   :  { %v1208_v63 = vadd.f32 %v1206_v62, %v1198_v10 }
0x1e3a   :  { %2256 = vtanh.f32 %v1208_v63 }
0x1e44   :  { %v2257_v0 = vpop.eup %2256 }
0x1e45   :  { %1211 = vrot.lane.b32.xlu1 %v2257_v0, %s2309_s3 }
0x1eb7   :  { %v1212_v2 = vpop.permute.xlu1 %1211 }
0x1eb8   :  { %v1214_v8 = vmul.f32 %v2255_v58, %v1212_v2  ;;  %v892_v58 = vadd.f32 %v2626_v29, %v2580_v17 }
0x1eba   :  { %v2655_v21 = vpack.c.bf16 %v1214_v8, %v1214_v8 }
0x1ebc   :  { %1219 = vrot.lane.b32.xlu0 %v2655_v21, %s2310_s16 }
0x1f2e   :  { %v1220_v11 = vpop.permute.xlu0 %1219 }
0x1f2f   :  { %2113 = vmatmul.mubr.msk.bf16.vlgmr.msra.gmra.mrb[24].mxu0 %vm177_vm4, %v1220_v11 }
0x1f30   :  { %2125 = vmatpush3.bf16.msra.mxu0 %v2543_v1  ;;  %2128 = vmatprep.mubr.msk.bf16.mxu0 %vm2307_vm2, %v2306_v4 }
0x1f31   :  { %2126 = vmatprep.subr.bf16.mxu0 %v2306_v4 }
0x1f34   :  { %2127 = vmatpush3.bf16.msra.mxu0 %v2551_v53 }
0x2002   :  { %v1258_v13 = vpop.f32.mrb[24].mxu0 }
0x2003   :  { %v1264_v14 = vadd.f32 %v1258_v13, %v884_v9  ;;  %v2114_v16 = vpop.f32.mrb[25].mxu0 }
0x2004   :  { %v1261_v18 = vpop.f32.mrb[26].mxu0 }
0x2005   :  { %v1862_v20 = vmul.f32 -1.442695, %v1264_v14  ;;  %v2115_v22 = vpop.f32.mrb[27].mxu0 }
0x2007   :  { %2258 = vpow2.f32 %v1862_v20 }
0x2011   :  { %v2259_v26 = vpop.eup %2258 }
0x2012   :  { %v1268_v27 = vadd.f32 1.0, %v2259_v26 }
0x2014   :  { %2260 = vrcp.f32 %v1268_v27 }
0x201e   :  { %v2261_v28 = vpop.eup %2260 }
0x201f   :  { %v1271_v30 = vmul.f32 2.0, %v2261_v28  ;;  %v1273_v5 = vmul.f32 %v2261_v28, %v1208_v63 }
0x2021   :  { %v1863_v31 = vadd.f32 -1.0, %v1271_v30 }
0x2023   :  { %1275 = vrot.lane.b32.xlu1 %v1863_v31, %s2309_s3 }
0x2095   :  { %v1276_v7 = vpop.permute.xlu1 %1275 }
0x2096   :  { %v1278_v32 = vmul.f32 %v2261_v28, %v1276_v7 }
0x2098   :  { %1280 = vrot.lane.b32.xlu0 %v1278_v32, %s2310_s16 }
0x210a   :  { %v1281_v33 = vpop.permute.xlu0 %1280 }
0x210b   :  { %v1283_v25 = vadd.f32 %v1281_v33, %v1273_v5 }
0x210d   :  { %2262 = vtanh.f32 %v1283_v25 }
0x2117   :  { %v2263_v34 = vpop.eup %2262 }
0x2118   :  { %1286 = vrot.lane.b32.xlu1 %v2263_v34, %s2309_s3 }
0x218a   :  { %v1287_v35 = vpop.permute.xlu1 %1286 }
0x218b   :  { %v1289_v36 = vmul.f32 %v2261_v28, %v1287_v35  ;;  %v895_v28 = vadd.f32 %v2630_v23, %v2580_v17 }
0x218d   :  { %v2670_v38 = vpack.c.bf16 %v1289_v36, %v1289_v36 }
0x218f   :  { %1298 = vrot.lane.b32.xlu0 %v2670_v38, %s2310_s16 }
0x2201   :  { %v1299_v39 = vpop.permute.xlu0 %1298 }
0x2202   :  { %2121 = vmatmul.mubr.msk.bf16.vlgmr.msra.gmra.mrb[40].mxu1 %vm177_vm4, %v1299_v39 }
0x2203   :  { %2133 = vmatpush3.bf16.msra.mxu1 %v2543_v1  ;;  %2136 = vmatprep.mubr.msk.bf16.mxu1 %vm2307_vm2, %v2306_v4 }
0x2204   :  { %2134 = vmatprep.subr.bf16.mxu1 %v2306_v4 }
0x2207   :  { %2135 = vmatpush3.bf16.msra.mxu1 %v2551_v53 }
0x2208   :  { %2140 = vmatprep.subr.bf16.mxu1 %v2306_v4 }
0x22d5   :  { %v1337_v41 = vpop.f32.mrb[40].mxu1 }
0x22d6   :  { %v1343_v42 = vadd.f32 %v1337_v41, %v887_v40  ;;  %v2122_v6 = vpop.f32.mrb[41].mxu1  ;;  %v2166_v41 = vld [vmem:[%s2813_s7 + $0x40] sm:$0xff]  }
0x22d7   :  { %v1340_v43 = vpop.f32.mrb[42].mxu1  ;;  %1965 = vmatprep.subr.bf16.mxu0 %v2166_v41 }
0x22d8   :  { %v1866_v45 = vmul.f32 -1.442695, %v1343_v42  ;;  %v2123_v46 = vpop.f32.mrb[43].mxu1  ;;  %v2168_v42 = vld [vmem:[%s2813_s7 + $0x48] sm:$0xff]   ;;  %v2170_v43 = vld [vmem:[%s2813_s7 + $0x50] sm:$0xff]  }
0x22d9   :  { %v2172_v46 = vld [vmem:[%s2813_s7 + $0x58] sm:$0xff]  }
0x22da   :  { %2264 = vpow2.f32 %v1866_v45  ;;  %v2171_v45 = vld [vmem:[%s2813_s7 + $0x10] sm:$0xff]  }
0x22e4   :  { %v2265_v1 = vpop.eup %2264 }
0x22e5   :  { %v1347_v47 = vadd.f32 1.0, %v2265_v1 }
0x22e7   :  { %2266 = vrcp.f32 %v1347_v47  ;;  %v2174_v47 = vld [vmem:[%s2813_s7 + $0x60] sm:$0xff]  }
0x22f1   :  { %v2267_v48 = vpop.eup %2266 }
0x22f2   :  { %v1350_v15 = vmul.f32 2.0, %v2267_v48  ;;  %v1352_v12 = vmul.f32 %v2267_v48, %v1283_v25 }
0x22f4   :  { %v1867_v50 = vadd.f32 -1.0, %v1350_v15 }
0x22f6   :  { %1354 = vrot.lane.b32.xlu1 %v1867_v50, %s2309_s3  ;;  %v2176_v50 = vld [vmem:[%s2813_s7 + $0x68] sm:$0xff]  }
0x2368   :  { %v1355_v53 = vpop.permute.xlu1 %1354 }
0x2369   :  { %v1357_v51 = vmul.f32 %v2267_v48, %v1355_v53 }
0x236b   :  { %1359 = vrot.lane.b32.xlu0 %v1357_v51, %s2310_s16  ;;  %v2177_v51 = vld [vmem:[%s2813_s7 + $0x28] sm:$0xff]  }
0x23dd   :  { %v1360_v19 = vpop.permute.xlu0 %1359 }
0x23de   :  { %v1362_v52 = vadd.f32 %v1360_v19, %v1352_v12  ;;  %v2178_v12 = vld [vmem:[%s2813_s7 + $0x70] sm:$0xff]  }
0x23df   :  { %v2179_v19 = vld [vmem:[%s2813_s7 + $0x30] sm:$0xff]  }
0x23e0   :  { %2268 = vtanh.f32 %v1362_v52 }
0x23ea   :  { %v2269_v54 = vpop.eup %2268 }
0x23eb   :  { %1365 = vrot.lane.b32.xlu1 %v2269_v54, %s2309_s3 }
0x245d   :  { %v1366_v55 = vpop.permute.xlu1 %1365 }
0x245e   :  { %v1368_v56 = vmul.f32 %v2267_v48, %v1366_v55  ;;  %v2181_v55 = vld [vmem:[%s2813_s7 + $0x38] sm:$0xff]  }
0x2460   :  { %v1369_v3 = vpack.c.bf16 %v1368_v56, %v1368_v56 }
0x2462   :  { %1377 = vrot.lane.b32.xlu0 %v1369_v3, %s2310_s16 }
0x24d4   :  { %v1378_v57 = vpop.permute.xlu0 %1377 }
0x24d5   :  { %2129 = vmatmul.mubr.msk.bf16.vlgmr.msra.gmra.mrb[28].mxu0 %vm177_vm4, %v1378_v57 }
0x25a8   :  { %v1416_v59 = vpop.f32.mrb[28].mxu0 }
0x25a9   :  { %v1422_v60 = vadd.f32 %v1416_v59, %v892_v58  ;;  %v2130_v37 = vpop.f32.mrb[29].mxu0 }
0x25aa   :  { %v1419_v61 = vpop.f32.mrb[30].mxu0 }
0x25ab   :  { %v1870_v10 = vmul.f32 -1.442695, %v1422_v60  ;;  %v2131_v62 = vpop.f32.mrb[31].mxu0 }
0x25ac   :  { %v2185_v62 = vld [vmem:[%s2816_s10 + $0x8] sm:$0xff]  }
0x25ad   :  { %2270 = vpow2.f32 %v1870_v10 }
0x25b7   :  { %v2271_v63 = vpop.eup %2270 }
0x25b8   :  { %v1426_v0 = vadd.f32 1.0, %v2271_v63 }
0x25ba   :  { %2272 = vrcp.f32 %v1426_v0 }
0x25c4   :  { %v2273_v2 = vpop.eup %2272 }
0x25c5   :  { %v1429_v8 = vmul.f32 2.0, %v2273_v2  ;;  %v1431_v29 = vmul.f32 %v2273_v2, %v1362_v52  ;;  %v2180_v52 = vld [vmem:[%s2813_s7 + $0x78] sm:$0xff]  }
0x25c7   :  { %v1871_v11 = vadd.f32 -1.0, %v1429_v8 }
0x25c9   :  { %1433 = vrot.lane.b32.xlu1 %v1871_v11, %s2309_s3 }
0x263b   :  { %v1434_v9 = vpop.permute.xlu1 %1433 }
0x263c   :  { %v1436_v13 = vmul.f32 %v2273_v2, %v1434_v9  ;;  %v1895_v9 = vld [vmem:[%s2815_s9] ss:$0 sm:$0xff] }
0x263e   :  { %1438 = vrot.lane.b32.xlu0 %v1436_v13, %s2310_s16 }
0x26b0   :  { %v1439_v14 = vpop.permute.xlu0 %1438 }
0x26b1   :  { %v1441_v16 = vadd.f32 %v1439_v14, %v1431_v29 }
0x26b3   :  { %2274 = vtanh.f32 %v1441_v16 }
0x26bd   :  { %v2275_v18 = vpop.eup %2274 }
0x26be   :  { %1444 = vrot.lane.b32.xlu1 %v2275_v18, %s2309_s3  ;;  %v1896_v18 = vld [vmem:[%s2817_s11] ss:$0 sm:$0xff] }
0x2730   :  { %v1445_v20 = vpop.permute.xlu1 %1444 }
0x2731   :  { %v1447_v22 = vmul.f32 %v2273_v2, %v1445_v20  ;;  %v1894_v2 = vld [vmem:[%s2814_s8] ss:$0 sm:$0xff]  ;;  %s2282_s8 = scalar_lea.vmem %s1797_s20, 128 }
0x2732   :  { %p2283_p0 = scmp.ne.s32.totalorder %s1797_s20, %s2282_s8  ;;  %p2288_p2 = scmp.lt.s32.totalorder %s2282_s8, %s2282_s8 }
0x2733   :  { %v2693_v26 = vpack.c.bf16 %v1447_v22, %v1447_v22 }
0x2734   :  { %p2289_p3 = por %p2288_p2, %p2287_p1 }
0x2735   :  { %1456 = vrot.lane.b32.xlu0 %v2693_v26, %s2310_s16 }
0x2736   :  { %p2290_p4 = pnand %p2289_p3, %p2283_p0 }
0x27a7   :  { %v1457_v27 = vpop.permute.xlu0 %1456 }
0x27a8   :  { %2137 = vmatmul.mubr.msk.bf16.vlgmr.msra.gmra.mrb[44].mxu1 %vm177_vm4, %v1457_v27 }
0x27a9   :  { %2144 = vmatprep.mubr.msk.bf16.mxu1 %vm2307_vm2, %v2306_v4 }
0x287b   :  { %v1495_v30 = vpop.f32.mrb[44].mxu1 }
0x287c   :  { %v1501_v31 = vadd.f32 %v1495_v30, %v895_v28  ;;  %v2138_v7 = vpop.f32.mrb[45].mxu1 }
0x287d   :  { %v1498_v32 = vpop.f32.mrb[46].mxu1 }
0x287e   :  { %v1874_v5 = vmul.f32 -1.442695, %v1501_v31  ;;  %v2139_v33 = vpop.f32.mrb[47].mxu1 }
0x2880   :  { %2276 = vpow2.f32 %v1874_v5 }
0x288a   :  { %v2277_v25 = vpop.eup %2276 }
0x288b   :  { %v1505_v34 = vadd.f32 1.0, %v2277_v25 }
0x288d   :  { %2278 = vrcp.f32 %v1505_v34 }
0x2897   :  { %v2702_v35 = vpop.eup %2278 }
0x2898   :  { %v1508_v36 = vmul.f32 2.0, %v2702_v35  ;;  %v1510_v1 = vmul.f32 %v2702_v35, %v1441_v16 }
0x289a   :  { %v1875_v39 = vadd.f32 -1.0, %v1508_v36 }
0x289c   :  { %1512 = vrot.lane.b32.xlu1 %v1875_v39, %s2309_s3 }
0x28a0   :  { %1294 = vrot.lane.b32.xlu1 %v2670_v38, %s2310_s16  ;;  %v2167_v38 = vld [vmem:[%s2813_s7] sm:$0xff]  }
0x28a1   :  { %1966 = vmatpush3.bf16.msra.mxu0 %v2167_v38 }
0x28a2   :  { %1967 = vmatprep.subr.bf16.mxu0 %v2168_v42 }
0x28a4   :  { %1373 = vrot.lane.b32.xlu1 %v1369_v3, %s2309_s3 }
0x290e   :  { %v1513_v17 = vpop.permute.xlu1 %1512 }
0x290f   :  { %v1515_v23 = vmul.f32 %v2702_v35, %v1513_v17 }
0x2911   :  { %1517 = vrot.lane.b32.xlu0 %v1515_v23, %s2310_s16 }
0x2912   :  { %v1295_v40 = vpop.permute.xlu1 %1294 }
0x2913   :  { %1297 = vst.msk [vmem:[#allocation3 + $0x4] sm:$0xf] %vm252_vm3, %v1295_v40 }
0x2915   :  { %980 = vrot.lane.b32.xlu0 %v2587_v44, %s2310_s16  ;;  %v2169_v44 = vld [vmem:[%s2813_s7 + $0x8] sm:$0xff]  }
0x2916   :  { %v1374_v6 = vpop.permute.xlu1 %1373  ;;  %1968 = vmatpush3.bf16.msra.mxu0 %v2169_v44 }
0x2917   :  { %1376 = vst.msk [vmem:[#allocation3 + $0x4] sm:$0xf] %vm1062_vm6, %v1374_v6  ;;  %1969 = vmatprep.subr.bf16.mxu0 %v2170_v43 }
0x2919   :  { %1059 = vrot.lane.b32.xlu0 %v2611_v24, %s2309_s3  ;;  %v2173_v24 = vld [vmem:[%s2813_s7 + $0x18] sm:$0xff]  }
0x291a   :  { %1970 = vmatpush3.bf16.msra.mxu0 %v2171_v45 }
0x291b   :  { %1971 = vmatprep.subr.bf16.mxu0 %v2172_v46 }
0x291d   :  { %1139 = vrot.lane.b32.xlu0 %v2639_v49, %s2311_s2  ;;  %v2175_v49 = vld [vmem:[%s2813_s7 + $0x20] sm:$0xff]  }
0x291e   :  { %1972 = vmatpush3.bf16.msra.mxu0 %v2173_v24 }
0x291f   :  { %1973 = vmatprep.subr.bf16.mxu0 %v2174_v47 }
0x2922   :  { %1974 = vmatpush3.bf16.msra.mxu0 %v2175_v49 }
0x2923   :  { %1975 = vmatprep.subr.bf16.mxu0 %v2176_v50 }
0x2926   :  { %1976 = vmatpush3.bf16.msra.mxu0 %v2177_v51 }
0x2927   :  { %1977 = vmatprep.subr.bf16.mxu0 %v2178_v12 }
0x292a   :  { %1978 = vmatpush3.bf16.msra.mxu0 %v2179_v19 }
0x292b   :  { %1979 = vmatprep.subr.bf16.mxu0 %v2180_v52 }
0x292e   :  { %1980 = vmatpush3.bf16.msra.mxu0 %v2181_v55 }
0x2983   :  { %v1518_v48 = vpop.permute.xlu0 %1517 }
0x2984   :  { %v1520_v15 = vadd.f32 %v1518_v48, %v1510_v1 }
0x2986   :  { %2280 = vtanh.f32 %v1520_v15 }
0x2987   :  { %v981_v53 = vpop.permute.xlu0 %980 }
0x2988   :  { %983 = vst.msk [vmem:[#allocation3] sm:$0xf] %vm252_vm3, %v981_v53 }
0x298b   :  { %v1060_v54 = vpop.permute.xlu0 %1059 }
0x298c   :  { %1063 = vst.msk [vmem:[#allocation3] sm:$0xf] %vm1062_vm6, %v1060_v54 }
0x298f   :  { %v1140_v56 = vpop.permute.xlu0 %1139 }
0x2990   :  { %v2281_v3 = vpop.eup %2280  ;;  %1143 = vst.msk [vmem:[#allocation3] sm:$0xf] %vm1142_vm7, %v1140_v56 }
0x2991   :  { %1217 = vst.msk [vmem:[#allocation3] sm:$0xf] %vm1216_vm8, %v2655_v21  ;;  %1523 = vrot.lane.b32.xlu1 %v2281_v3, %s2309_s3  ;;  %v2184_v21 = vld [vmem:[%s2816_s10] sm:$0xff]  }
0x2992   :  { %2141 = vmatpush3.bf16.msra.mxu1 %v2184_v21 }
0x2993   :  { %2142 = vmatprep.subr.bf16.mxu1 %v2306_v4 }
0x2995   :  { %1452 = vrot.lane.b32.xlu1 %v2693_v26, %s2311_s2 }
0x2996   :  { %2143 = vmatpush3.bf16.msra.mxu1 %v2185_v62 }
0x2a03   :  { %v1524_v57 = vpop.permute.xlu1 %1523 }
0x2a04   :  { %v1526_v58 = vmul.f32 %v2702_v35, %v1524_v57 }
0x2a06   :  { %v1527_v59 = vpack.c.bf16 %v1526_v58, %v1526_v58 }
0x2a07   :  { %v1453_v60 = vpop.permute.xlu1 %1452 }
0x2a08   :  { %1455 = vst.msk [vmem:[#allocation3 + $0x4] sm:$0xf] %vm1142_vm7, %v1453_v60 }
0x2a09   :  { %1528 = vst.msk [vmem:[#allocation3 + $0x4] sm:$0xf] %vm1216_vm8, %v1527_v59 }
0x2a10   :  { %v1529_v37 = vld [vmem:[#allocation3] sm:$0xff] }
0x2a11   :  { %v1876_v61 = vcombine.low %v1529_v37, %v1529_v37  ;;  %v1877_v10 = vcombine.high %v1529_v37, %v1529_v37 }
0x2a13   :  { %1697 = vmatprep.mubr.bf16.mxu0 %v1877_v10 }
0x2a14   :  { %1698 = vmatmul.mubr.bf16.vlgmr.msra.gmra.mrb[32].mxu0 %v1876_v61 }
0x2ae7   :  { %v1981_v63 = vpop.f32.mrb[32].mxu0 }
0x2ae8   :  { %v1982_v0 = vpop.f32.mrb[33].mxu0 }
0x2ae9   :  { %v1983_v8 = vadd.f32 %v1982_v0, %v1981_v63  ;;  %v1984_v11 = vpop.f32.mrb[34].mxu0 }
0x2aea   :  { %v1985_v13 = vpop.f32.mrb[35].mxu0 }
0x2aeb   :  { %v1712_v29 = vmul.f32 %v1983_v8, %v1894_v2 }
0x2aed   :  { %v1720_v4 = vadd.f32 %v1895_v9, %v1712_v29 }
0x2aef   :  { %v1721_v14 = vmax.f32 %v1720_v4, 0.0 }
0x2af1   :  { %v1722_v16 = vpack.c.bf16 %v1721_v14, %v1721_v14 }
0x2af3   :  { %2145 = vmatmul.mubr.msk.bf16.vlgmr.msra.gmra.mrb[48].mxu1 %vm177_vm4, %v1722_v16 }
0x2bc6   :  { %v1783_v20 = vpop.f32.mrb[48].mxu1 }
0x2bc7   :  { %v1784_v22 = vadd.f32 %v1896_v18, %v1783_v20  ;;  %v2146_v26 = vpop.f32.mrb[49].mxu1 }
0x2bc8   :  { %v1786_v27 = vpop.f32.mrb[50].mxu1 }
0x2bc9   :  { %1789 = vst [vmem:[#allocation4] sm:$0xff] %v1784_v22  ;;  %v2147_v28 = vpop.f32.mrb[51].mxu1 }
0x2bca   :  { %2293 = shalt.err (!%p2290_p4)
}
0x2bcb   :  { %s2294_s11 = scalar_lea.hbm %s2818_s12, 128 }
0x2bcc   :  { %p2295_p5 = scmp.ne.s32.totalorder %s2818_s12, %s2294_s11  ;;  %p2298_p6 = scmp.lt.u32.totalorder %s2294_s11, %s2818_s12 }
0x2bce   :  { %p2300_p7 = pnand %p2298_p6, %p2295_p5 }
0x2bd0   :  { %2303 = shalt.err (!%p2300_p7)
}
0x2bd1   :  { %1799 = dma.vmem_to_hbm [thread:$0]  %s1797_s20, 128, %s2818_s12, [#allocation5]  }
0x2bd2   :  { %2304 = dma.done.wait [#allocation5], 128  }
0x2bd3   :  { %2305 = vsyncadd [#allocation5], 4294967168 }
0x2bd4   :  { %1803 = vsyncpa [#allocation5], 1 }

</bundles_post_ra>
